<compile_context>
chip_gen: v7x
topology: tpu7x:2x2x1
jax: 0.10.0
libtpu: 0.0.40
codegen_flags: <defaults>
</compile_context>

<pallas_src>
import math

import jax
import jax.numpy as jnp
from jax import lax
from jax.experimental import pallas as pl
from jax.experimental.pallas import tpu as pltpu

# ----------------------------- small config ---------------------------------
C = 3            # num_classes
L = 32           # config.input_size  (embed dim of patch features / text feats)
D = 16           # config.hidden_size (gated-attention hidden dim)
P = 8            # config.prototype_number (learnable_image_center rows)
NS = 16          # number of low-scale patches
NL = 16          # number of high-scale patches
CTX_DIM = 16     # synthetic CLIP text transformer width
T_SEQ = 8        # synthetic prompt length (power of two; mask uses >> 3)
N_CTX = 4        # learnable context tokens
MLP_HID = 64     # text-transformer MLP hidden
N2 = 2 * C       # low-scale + high-scale prompt per class


# ----------------------------- helpers ---------------------------------------
def _vspec(shape):
    nd = len(shape)
    return pl.BlockSpec(shape, lambda i, nd=nd: (0,) * nd)


def _sigmoid(x):
    return 1.0 / (1.0 + jnp.exp(-x))


def _ln(x, g, b, eps=1e-5):
    mu = jnp.mean(x, axis=-1, keepdims=True)
    var = jnp.mean(jnp.square(x - mu), axis=-1, keepdims=True)
    return (x - mu) * lax.rsqrt(var + eps) * g + b


def _softmax_rows(s):
    m = jnp.max(s, axis=-1, keepdims=True)
    e = jnp.exp(s - m)
    return e * pl.reciprocal(jnp.sum(e, axis=-1, keepdims=True), approx=True)


def _attend(q_in, kv_in, w, b, scale, mask):
    """Single-head attention, packed (E, 4E) QKVO weights + (1, 4E) biases.
    Matches nn.MultiheadAttention(num_heads=1) with in/out projections."""
    E = q_in.shape[-1]
    nq = q_in.shape[0]
    if q_in is kv_in:
        # self-attention: one lane-dense (E,3E) projection of the shared input
        proj = jnp.dot(q_in, w[:, :3 * E], preferred_element_type=jnp.float32) + b[:, :3 * E]
        qp, kp, vp = proj[:, :E], proj[:, E:2 * E], proj[:, 2 * E:3 * E]
    elif nq % 8 == 0 and kv_in.shape[0] % 8 == 0:
        # cross-attention: stack rows so q/k/v come from one wide matmul
        x = jnp.concatenate([q_in, kv_in], axis=0)
        proj = jnp.dot(x, w[:, :3 * E], preferred_element_type=jnp.float32) + b[:, :3 * E]
        qp = proj[:nq, :E]
        kp = proj[nq:, E:2 * E]
        vp = proj[nq:, 2 * E:3 * E]
    else:
        qp = jnp.dot(q_in, w[:, :E], preferred_element_type=jnp.float32) + b[:, :E]
        kp = jnp.dot(kv_in, w[:, E:2 * E], preferred_element_type=jnp.float32) + b[:, E:2 * E]
        vp = jnp.dot(kv_in, w[:, 2 * E:3 * E], preferred_element_type=jnp.float32) + b[:, 2 * E:3 * E]
    s = lax.dot_general(qp * scale, kp, (((1,), (1,)), ((), ())),
                        preferred_element_type=jnp.float32)
    s = jnp.where(mask, s, jnp.float32(-1e30))
    p = _softmax_rows(s)
    out = jnp.dot(p, vp, preferred_element_type=jnp.float32)
    return jnp.dot(out, w[:, 3 * E:], preferred_element_type=jnp.float32) + b[:, 3 * E:]


# ----------------------- fused forward kernel --------------------------------
def _vila_mil_kernel(x0_ref, sel_ref, tw_ref, tb_ref, tln_ref,
                     fc1w_ref, fc1b_ref, fc2w_ref, fc2b_ref, tproj_ref,
                     center_ref, xs_ref, xl_ref,
                     ca1w_ref, ca1b_ref, ca2w_ref, ca2b_ref, normgb_ref,
                     gatw_ref, gatb_ref, gatww_ref, gatbw_ref,
                     label_ref, out_ref):
    # ---------- text encoder: all 6 prompts fused in one (48,16) block ----------
    x0 = x0_ref[...]                                   # (N2*T, CTX) prompts + pos_emb
    tln = tln_ref[...]                                 # rows: ln1_g, ln1_b, ln2_g, ln2_b, lnf_g, lnf_b
    nt = N2 * T_SEQ
    r = lax.broadcasted_iota(jnp.int32, (nt, nt), 0)
    c = lax.broadcasted_iota(jnp.int32, (nt, nt), 1)
    txt_mask = jnp.logical_and((r >> 3) == (c >> 3), c <= r)   # block-diag causal (T=8)

    x2 = _ln(x0, tln[0:1], tln[1:2])
    x1 = x0 + _attend(x2, x2, tw_ref[...], tb_ref[...], 1.0 / math.sqrt(CTX_DIM), txt_mask)
    x2 = _ln(x1, tln[2:3], tln[3:4])
    h = jnp.dot(x2, fc1w_ref[...], preferred_element_type=jnp.float32) + fc1b_ref[...]
    h = h * _sigmoid(1.702 * h)                        # QuickGELU
    h = jnp.dot(h, fc2w_ref[...], preferred_element_type=jnp.float32) + fc2b_ref[...]
    x1 = x1 + h
    xf = _ln(x1, tln[4:5], tln[5:6])
    pooled = jnp.dot(sel_ref[...], xf, preferred_element_type=jnp.float32)            # (N2, CTX) eot gather
    text_feat = jnp.dot(pooled, tproj_ref[...], preferred_element_type=jnp.float32)   # (N2, L)

    # ---------- cross_attention_1: low + high scale batched in one block ----------
    center = center_ref[...]
    center2 = jnp.concatenate([center, center], axis=0)            # (2P, L)
    kv1 = jnp.concatenate([xs_ref[...], xl_ref[...]], axis=0)      # (NS+NL, L)
    qr = lax.broadcasted_iota(jnp.int32, (2 * P, NS + NL), 0)
    kc = lax.broadcasted_iota(jnp.int32, (2 * P, NS + NL), 1)
    mask1 = jnp.logical_or(jnp.logical_and(qr < P, kc < NS),
                           jnp.logical_and(qr >= P, kc >= NS))
    comp = _attend(center2, kv1, ca1w_ref[...], ca1b_ref[...], 1.0 / math.sqrt(L), mask1)
    ngb = normgb_ref[...]
    comp = _ln(comp + center2, ngb[0:1], ngb[1:2])                 # (2P, L)

    # ---------- gated MIL attention pooling (both scales) ----------
    gates = jnp.dot(comp, gatw_ref[...], preferred_element_type=jnp.float32) + gatb_ref[...]
    av = jnp.tanh(gates[:, :D])
    au = _sigmoid(gates[:, D:])
    a = jnp.dot(av * au, gatww_ref[...], preferred_element_type=jnp.float32) + gatbw_ref[...]  # (2P, 1)

    def _pool(a_g, h_g):
        m = jnp.max(a_g, axis=0, keepdims=True)
        e = jnp.exp(a_g - m)
        wgt = e * pl.reciprocal(jnp.sum(e, axis=0, keepdims=True), approx=True)
        return jnp.sum(wgt * h_g, axis=0, keepdims=True)           # (1, L) == A @ H

    img_lo = _pool(a[:P], comp[:P])
    img_hi = _pool(a[P:], comp[P:])

    # ---------- cross_attention_2: text queries vs image context, batched ----------
    kv2 = jnp.concatenate([comp[:P], xs_ref[...], comp[P:], xl_ref[...]], axis=0)  # (2*(P+NS), L)
    qr2 = lax.broadcasted_iota(jnp.int32, (N2, 2 * (P + NS)), 0)
    kc2 = lax.broadcasted_iota(jnp.int32, (N2, 2 * (P + NS)), 1)
    mask2 = jnp.logical_or(jnp.logical_and(qr2 < C, kc2 < P + NS),
                           jnp.logical_and(qr2 >= C, kc2 >= P + NS))
    tctx = _attend(text_feat, kv2, ca2w_ref[...], ca2b_ref[...], 1.0 / math.sqrt(L), mask2)
    text_feat = tctx + text_feat                                   # (N2, L)

    # ---------- logits = img_lo @ text_lo^T + img_hi @ text_hi^T ; CE ; softmax ----------
    logits = (lax.dot_general(img_lo, text_feat[:C], (((1,), (1,)), ((), ())),
                              preferred_element_type=jnp.float32)
              + lax.dot_general(img_hi, text_feat[C:], (((1,), (1,)), ((), ())),
                                preferred_element_type=jnp.float32))     # (1, C)
    m = jnp.max(logits, axis=-1, keepdims=True)
    z = jnp.sum(jnp.exp(logits - m), axis=-1, keepdims=True)
    logp = logits - m - jnp.log(z)
    probs = jnp.exp(logp)
    lbl = label_ref[0]
    onehot = (lax.broadcasted_iota(jnp.int32, (1, C), 1) == lbl).astype(jnp.float32)
    loss = -jnp.sum(onehot * logp, axis=-1, keepdims=True)               # (1, 1)

    # one lane-dense (8,128) output slab: row0=logits, row1=probs, row2=loss
    out_ref[...] = jnp.zeros((8, 128), jnp.float32)
    out_ref[0:1, 0:C] = logits
    out_ref[1:2, 0:C] = probs
    out_ref[2:3, 0:1] = loss


# ----------------------- parameter construction ------------------------------
def init_params(key):
    keys = list(jax.random.split(key, 40))
    ki = iter(keys)

    def nrm(shape, std=0.02):
        return jax.random.normal(next(ki), shape, jnp.float32) * std

    def mha_params(E):
        return dict(wq=nrm((E, E)), bq=jnp.zeros((1, E), jnp.float32),
                    wk=nrm((E, E)), bk=jnp.zeros((1, E), jnp.float32),
                    wv=nrm((E, E)), bv=jnp.zeros((1, E), jnp.float32),
                    wo=nrm((E, E)), bo=jnp.zeros((1, E), jnp.float32))

    ca1 = mha_params(L)          # cross_attention_1
    ca2 = mha_params(L)          # cross_attention_2

    gated = dict(wv=nrm((L, D)), bv=nrm((1, D)),        # attention_V (Linear+Tanh)
                 wu=nrm((L, D)), bu=nrm((1, D)),        # attention_U (Linear+Sigmoid)
                 ww=nrm((D, 1)), bw=nrm((1, 1)))        # attention_weights

    norm_g = jnp.ones((1, L), jnp.float32)
    norm_b = jnp.zeros((1, L), jnp.float32)

    # trunc_normal_(std=0.02) for learnable_image_center  (torch (P,1,L), squeezed)
    center = jax.random.truncated_normal(next(ki), -2.0, 2.0, (P, L), jnp.float32) * 0.02

    eot_idx = jnp.array([T_SEQ - 1 - (i % 2) for i in range(N2)], jnp.int32)
    tokens = jnp.tile(jnp.arange(T_SEQ, dtype=jnp.int32)[None, :], (N2, 1))
    tokens = tokens.at[jnp.arange(N2), eot_idx].set(1000)   # argmax == eot position

    text = dict(
        token_prefix=nrm((N2, 1, CTX_DIM), 1.0),
        token_suffix=nrm((N2, T_SEQ - 1 - N_CTX, CTX_DIM), 1.0),
        ctx=nrm((N_CTX, CTX_DIM), 0.02),
        pos_emb=nrm((T_SEQ, CTX_DIM), 0.02),
        ln1_g=jnp.ones((1, CTX_DIM), jnp.float32), ln1_b=jnp.zeros((1, CTX_DIM), jnp.float32),
        attn=mha_params(CTX_DIM),
        ln2_g=jnp.ones((1, CTX_DIM), jnp.float32), ln2_b=jnp.zeros((1, CTX_DIM), jnp.float32),
        fc1_w=nrm((CTX_DIM, MLP_HID)), fc1_b=jnp.zeros((1, MLP_HID), jnp.float32),
        fc2_w=nrm((MLP_HID, CTX_DIM)), fc2_b=jnp.zeros((1, CTX_DIM), jnp.float32),
        lnf_g=jnp.ones((1, CTX_DIM), jnp.float32), lnf_b=jnp.zeros((1, CTX_DIM), jnp.float32),
        text_proj=nrm((CTX_DIM, L)),
        tokenized=tokens,
    )

    return dict(ca1=ca1, ca2=ca2, gated=gated, norm_g=norm_g, norm_b=norm_b,
                center=center, text=text)


def _pack_qkvo(p):
    w = jnp.concatenate([p['wq'], p['wk'], p['wv'], p['wo']], axis=1)   # (E, 4E)
    b = jnp.concatenate([p['bq'], p['bk'], p['bv'], p['bo']], axis=1)   # (1, 4E)
    return w, b


# ----------------------- ViLa_MIL_Model.forward -------------------------------
def vila_mil_forward(params, x_s, coord_s, x_l, coords_l, label):
    del coord_s, coords_l  # unused by the PyTorch forward as well
    tp = params['text']

    # PromptLearner.forward: cat([prefix, ctx, suffix], dim=1)  + pos embedding (glue)
    ctx = jnp.broadcast_to(tp['ctx'][None], (N2, N_CTX, CTX_DIM))
    prompts = jnp.concatenate([tp['token_prefix'], ctx, tp['token_suffix']], axis=1)
    x0 = (prompts + tp['pos_emb'][None]).reshape(N2 * T_SEQ, CTX_DIM)   # (48, 16)

    # eot gather (tokenized_prompts.argmax(-1)) expressed as a one-hot selection matmul
    eot = jnp.argmax(tp['tokenized'], axis=-1)
    sel = jax.nn.one_hot(jnp.arange(N2) * T_SEQ + eot, N2 * T_SEQ, dtype=jnp.float32)

    # packed, lane-dense parameter slabs (fewer DMA descriptors, wider MXU pushes)
    tw, tb = _pack_qkvo(tp['attn'])                                      # (16,64)/(1,64)
    tln = jnp.concatenate([tp['ln1_g'], tp['ln1_b'], tp['ln2_g'], tp['ln2_b'],
                           tp['lnf_g'], tp['lnf_b']], axis=0)            # (6,16)
    ca1w, ca1b = _pack_qkvo(params['ca1'])                               # (32,128)/(1,128)
    ca2w, ca2b = _pack_qkvo(params['ca2'])
    norm_gb = jnp.concatenate([params['norm_g'], params['norm_b']], axis=0)  # (2,32)
    g = params['gated']
    gat_w = jnp.concatenate([g['wv'], g['wu']], axis=1)                  # (32,32)
    gat_b = jnp.concatenate([g['bv'], g['bu']], axis=1)                  # (1,32)

    vmem_args = (x0, sel, tw, tb, tln,
                 tp['fc1_w'], tp['fc1_b'], tp['fc2_w'], tp['fc2_b'], tp['text_proj'],
                 params['center'], x_s.astype(jnp.float32), x_l.astype(jnp.float32),
                 ca1w, ca1b, ca2w, ca2b, norm_gb,
                 gat_w, gat_b, g['ww'], g['bw'])
    in_specs = [_vspec(a.shape) for a in vmem_args]
    in_specs.append(pl.BlockSpec(memory_space=pltpu.MemorySpace.SMEM))   # label scalar

    out = pl.pallas_call(
        _vila_mil_kernel,
        out_shape=jax.ShapeDtypeStruct((8, 128), jnp.float32),
        grid=(1,),
        in_specs=in_specs,
        out_specs=_vspec((8, 128)),
    )(*vmem_args, label.astype(jnp.int32))

    Y_prob = out[1:2, 0:C]
    loss = out[2, 0]
    Y_hat = jnp.argmax(Y_prob, axis=1)                  # topk(...,1)[1].squeeze(1)
    return Y_prob, Y_hat, loss


# ------------------------------- main -----------------------------------------
if __name__ == "__main__":
    key = jax.random.PRNGKey(0)
    pkey, dkey = jax.random.split(key)
    params = init_params(pkey)

    k1, k2 = jax.random.split(dkey)
    x_s = jax.random.normal(k1, (NS, L), jnp.float32)      # low-scale patch features
    x_l = jax.random.normal(k2, (NL, L), jnp.float32)      # high-scale patch features
    coord_s = jnp.zeros((NS, 2), jnp.float32)
    coords_l = jnp.zeros((NL, 2), jnp.float32)
    label = jnp.array([1], jnp.int32)

    fwd = jax.jit(vila_mil_forward)
    Y_prob, Y_hat, loss = fwd(params, x_s, coord_s, x_l, coords_l, label)
    jax.block_until_ready((Y_prob, Y_hat, loss))
    assert Y_prob.shape == (1, C) and Y_hat.shape == (1,)
    assert bool(jnp.isfinite(loss))
    print("KERNEL_OK")
</pallas_src>

<mosaic_0001>
module attributes {stable_mosaic.version = 11 : i64} {
  func.func @_vila_mil_kernel(%arg0: i32, %arg1: memref<48x16xf32, #tpu.memory_space<vmem>>, %arg2: memref<6x48xf32, #tpu.memory_space<vmem>>, %arg3: memref<16x64xf32, #tpu.memory_space<vmem>>, %arg4: memref<1x64xf32, #tpu.memory_space<vmem>>, %arg5: memref<6x16xf32, #tpu.memory_space<vmem>>, %arg6: memref<16x64xf32, #tpu.memory_space<vmem>>, %arg7: memref<1x64xf32, #tpu.memory_space<vmem>>, %arg8: memref<64x16xf32, #tpu.memory_space<vmem>>, %arg9: memref<1x16xf32, #tpu.memory_space<vmem>>, %arg10: memref<16x32xf32, #tpu.memory_space<vmem>>, %arg11: memref<8x32xf32, #tpu.memory_space<vmem>>, %arg12: memref<16x32xf32, #tpu.memory_space<vmem>>, %arg13: memref<16x32xf32, #tpu.memory_space<vmem>>, %arg14: memref<32x128xf32, #tpu.memory_space<vmem>>, %arg15: memref<1x128xf32, #tpu.memory_space<vmem>>, %arg16: memref<32x128xf32, #tpu.memory_space<vmem>>, %arg17: memref<1x128xf32, #tpu.memory_space<vmem>>, %arg18: memref<2x32xf32, #tpu.memory_space<vmem>>, %arg19: memref<32x32xf32, #tpu.memory_space<vmem>>, %arg20: memref<1x32xf32, #tpu.memory_space<vmem>>, %arg21: memref<16x1xf32, #tpu.memory_space<vmem>>, %arg22: memref<1x1xf32, #tpu.memory_space<vmem>>, %arg23: memref<1xi32, #tpu.memory_space<smem>>, %arg24: memref<8x128xf32, #tpu.memory_space<vmem>>) attributes {dimension_semantics = [#tpu.dimension_semantics<arbitrary>], iteration_bounds = array<i64: 1>, scalar_prefetch = 0 : i64, scratch_operands = 0 : i64, tpu.core_type = #tpu.core_type<tc>, window_params = [{pipeline_mode = #tpu.pipeline_mode<synchronous>, transform_indices = @transform_0, window_bounds = array<i64: 48, 16>}, {pipeline_mode = #tpu.pipeline_mode<synchronous>, transform_indices = @transform_1, window_bounds = array<i64: 6, 48>}, {pipeline_mode = #tpu.pipeline_mode<synchronous>, transform_indices = @transform_2, window_bounds = array<i64: 16, 64>}, {pipeline_mode = #tpu.pipeline_mode<synchronous>, transform_indices = @transform_3, window_bounds = array<i64: 1, 64>}, {pipeline_mode = #tpu.pipeline_mode<synchronous>, transform_indices = @transform_4, window_bounds = array<i64: 6, 16>}, {pipeline_mode = #tpu.pipeline_mode<synchronous>, transform_indices = @transform_5, window_bounds = array<i64: 16, 64>}, {pipeline_mode = #tpu.pipeline_mode<synchronous>, transform_indices = @transform_6, window_bounds = array<i64: 1, 64>}, {pipeline_mode = #tpu.pipeline_mode<synchronous>, transform_indices = @transform_7, window_bounds = array<i64: 64, 16>}, {pipeline_mode = #tpu.pipeline_mode<synchronous>, transform_indices = @transform_8, window_bounds = array<i64: 1, 16>}, {pipeline_mode = #tpu.pipeline_mode<synchronous>, transform_indices = @transform_9, window_bounds = array<i64: 16, 32>}, {pipeline_mode = #tpu.pipeline_mode<synchronous>, transform_indices = @transform_10, window_bounds = array<i64: 8, 32>}, {pipeline_mode = #tpu.pipeline_mode<synchronous>, transform_indices = @transform_11, window_bounds = array<i64: 16, 32>}, {pipeline_mode = #tpu.pipeline_mode<synchronous>, transform_indices = @transform_12, window_bounds = array<i64: 16, 32>}, {pipeline_mode = #tpu.pipeline_mode<synchronous>, transform_indices = @transform_13, window_bounds = array<i64: 32, 128>}, {pipeline_mode = #tpu.pipeline_mode<synchronous>, transform_indices = @transform_14, window_bounds = array<i64: 1, 128>}, {pipeline_mode = #tpu.pipeline_mode<synchronous>, transform_indices = @transform_15, window_bounds = array<i64: 32, 128>}, {pipeline_mode = #tpu.pipeline_mode<synchronous>, transform_indices = @transform_16, window_bounds = array<i64: 1, 128>}, {pipeline_mode = #tpu.pipeline_mode<synchronous>, transform_indices = @transform_17, window_bounds = array<i64: 2, 32>}, {pipeline_mode = #tpu.pipeline_mode<synchronous>, transform_indices = @transform_18, window_bounds = array<i64: 32, 32>}, {pipeline_mode = #tpu.pipeline_mode<synchronous>, transform_indices = @transform_19, window_bounds = array<i64: 1, 32>}, {pipeline_mode = #tpu.pipeline_mode<synchronous>, transform_indices = @transform_20, window_bounds = array<i64: 16, 1>}, {pipeline_mode = #tpu.pipeline_mode<synchronous>, transform_indices = @transform_21, window_bounds = array<i64: 1, 1>}, {transform_indices = @transform_22, window_bounds = array<i64: 1>}, {pipeline_mode = #tpu.pipeline_mode<synchronous>, transform_indices = @transform_23, window_bounds = array<i64: 8, 128>}]} {
    %c0 = arith.constant 0 : index
    %c0_0 = arith.constant 0 : index
    %0 = vector.load %arg1[%c0, %c0_0] : memref<48x16xf32, #tpu.memory_space<vmem>>, vector<48x16xf32>
    %c0_1 = arith.constant 0 : index
    %c0_2 = arith.constant 0 : index
    %1 = vector.load %arg5[%c0_1, %c0_2] : memref<6x16xf32, #tpu.memory_space<vmem>>, vector<6x16xf32>
    %2 = tpu.iota {dimensions = array<i32: 0>} : vector<48x48xi32>
    %3 = tpu.iota {dimensions = array<i32: 1>} : vector<48x48xi32>
    %c3_i32 = arith.constant 3 : i32
    %4 = vector.broadcast %c3_i32 : i32 to vector<48x48xi32>
    %5 = arith.shrsi %2, %4 : vector<48x48xi32>
    %c3_i32_3 = arith.constant 3 : i32
    %6 = vector.broadcast %c3_i32_3 : i32 to vector<48x48xi32>
    %7 = arith.shrsi %3, %6 : vector<48x48xi32>
    %8 = arith.cmpi eq, %5, %7 : vector<48x48xi32>
    %9 = arith.cmpi sle, %3, %2 : vector<48x48xi32>
    %10 = arith.andi %8, %9 : vector<48x48xi1>
    %11 = vector.extract_strided_slice %1 {offsets = [0, 0], sizes = [1, 16], strides = [1, 1]} : vector<6x16xf32> to vector<1x16xf32>
    %12 = vector.extract_strided_slice %1 {offsets = [1, 0], sizes = [1, 16], strides = [1, 1]} : vector<6x16xf32> to vector<1x16xf32>
    %cst = arith.constant dense<0.000000e+00> : vector<48xf32>
    %13 = vector.multi_reduction <add>, %0, %cst [1] : vector<48x16xf32> to vector<48xf32>
    %14 = vector.shape_cast %13 : vector<48xf32> to vector<48x1xf32>
    %cst_4 = arith.constant 1.600000e+01 : f32
    %15 = vector.broadcast %cst_4 : f32 to vector<48x1xf32>
    %16 = arith.divf %14, %15 : vector<48x1xf32>
    %17 = vector.broadcast %16 : vector<48x1xf32> to vector<48x16xf32>
    %18 = arith.subf %0, %17 : vector<48x16xf32>
    %19 = arith.mulf %18, %18 : vector<48x16xf32>
    %cst_5 = arith.constant dense<0.000000e+00> : vector<48xf32>
    %20 = vector.multi_reduction <add>, %19, %cst_5 [1] : vector<48x16xf32> to vector<48xf32>
    %21 = vector.shape_cast %20 : vector<48xf32> to vector<48x1xf32>
    %cst_6 = arith.constant 1.600000e+01 : f32
    %22 = vector.broadcast %cst_6 : f32 to vector<48x1xf32>
    %23 = arith.divf %21, %22 : vector<48x1xf32>
    %24 = vector.broadcast %16 : vector<48x1xf32> to vector<48x16xf32>
    %25 = arith.subf %0, %24 : vector<48x16xf32>
    %cst_7 = arith.constant 9.99999974E-6 : f32
    %26 = vector.broadcast %cst_7 : f32 to vector<48x1xf32>
    %27 = arith.addf %23, %26 : vector<48x1xf32>
    %28 = math.rsqrt %27 : vector<48x1xf32>
    %29 = vector.broadcast %28 : vector<48x1xf32> to vector<48x16xf32>
    %30 = arith.mulf %25, %29 : vector<48x16xf32>
    %31 = vector.broadcast %11 : vector<1x16xf32> to vector<48x16xf32>
    %32 = arith.mulf %30, %31 : vector<48x16xf32>
    %33 = vector.broadcast %12 : vector<1x16xf32> to vector<48x16xf32>
    %34 = arith.addf %32, %33 : vector<48x16xf32>
    %c0_8 = arith.constant 0 : index
    %c0_9 = arith.constant 0 : index
    %35 = vector.load %arg3[%c0_8, %c0_9] : memref<16x64xf32, #tpu.memory_space<vmem>>, vector<16x64xf32>
    %c0_10 = arith.constant 0 : index
    %c0_11 = arith.constant 0 : index
    %36 = vector.load %arg4[%c0_10, %c0_11] : memref<1x64xf32, #tpu.memory_space<vmem>>, vector<1x64xf32>
    %37 = vector.extract_strided_slice %35 {offsets = [0, 0], sizes = [16, 48], strides = [1, 1]} : vector<16x64xf32> to vector<16x48xf32>
    %cst_12 = arith.constant dense<0.000000e+00> : vector<48x48xf32>
    %38 = tpu.matmul %34, %37, %cst_12 {dimension_numbers = #tpu.dot_dimension_numbers<[1], [0], [0], [1], [0, 0, 1, 1], [], []>} : vector<48x16xf32>, vector<16x48xf32>, vector<48x48xf32> -> vector<48x48xf32>
    %39 = vector.extract_strided_slice %36 {offsets = [0, 0], sizes = [1, 48], strides = [1, 1]} : vector<1x64xf32> to vector<1x48xf32>
    %40 = vector.broadcast %39 : vector<1x48xf32> to vector<48x48xf32>
    %41 = arith.addf %38, %40 : vector<48x48xf32>
    %42 = vector.extract_strided_slice %41 {offsets = [0, 0], sizes = [48, 16], strides = [1, 1]} : vector<48x48xf32> to vector<48x16xf32>
    %43 = vector.extract_strided_slice %41 {offsets = [0, 16], sizes = [48, 16], strides = [1, 1]} : vector<48x48xf32> to vector<48x16xf32>
    %44 = vector.extract_strided_slice %41 {offsets = [0, 32], sizes = [48, 16], strides = [1, 1]} : vector<48x48xf32> to vector<48x16xf32>
    %cst_13 = arith.constant 2.500000e-01 : f32
    %45 = vector.broadcast %cst_13 : f32 to vector<48x16xf32>
    %46 = arith.mulf %42, %45 : vector<48x16xf32>
    %cst_14 = arith.constant dense<0.000000e+00> : vector<48x48xf32>
    %47 = tpu.matmul %46, %43, %cst_14 {dimension_numbers = #tpu.dot_dimension_numbers<[1], [1], [0], [0], [0, 0, 1, 0], [], []>} : vector<48x16xf32>, vector<48x16xf32>, vector<48x48xf32> -> vector<48x48xf32>
    %cst_15 = arith.constant -1.000000e+30 : f32
    %48 = vector.broadcast %cst_15 : f32 to vector<48x48xf32>
    %49 = arith.select %10, %47, %48 : vector<48x48xi1>, vector<48x48xf32>
    %cst_16 = arith.constant dense<0xFF800000> : vector<48xf32>
    %50 = vector.multi_reduction <maximumf>, %49, %cst_16 [1] : vector<48x48xf32> to vector<48xf32>
    %51 = vector.shape_cast %50 : vector<48xf32> to vector<48x1xf32>
    %52 = vector.broadcast %51 : vector<48x1xf32> to vector<48x48xf32>
    %53 = arith.subf %49, %52 : vector<48x48xf32>
    %54 = math.exp %53 : vector<48x48xf32>
    %cst_17 = arith.constant dense<0.000000e+00> : vector<48xf32>
    %55 = vector.multi_reduction <add>, %54, %cst_17 [1] : vector<48x48xf32> to vector<48xf32>
    %56 = vector.shape_cast %55 : vector<48xf32> to vector<48x1xf32>
    %57 = tpu.reciprocal %56 {approx = true} : vector<48x1xf32> -> vector<48x1xf32>
    %58 = vector.broadcast %57 : vector<48x1xf32> to vector<48x48xf32>
    %59 = arith.mulf %54, %58 : vector<48x48xf32>
    %cst_18 = arith.constant dense<0.000000e+00> : vector<48x16xf32>
    %60 = tpu.matmul %59, %44, %cst_18 {dimension_numbers = #tpu.dot_dimension_numbers<[1], [0], [0], [1], [0, 0, 1, 1], [], []>} : vector<48x48xf32>, vector<48x16xf32>, vector<48x16xf32> -> vector<48x16xf32>
    %61 = vector.extract_strided_slice %35 {offsets = [0, 48], sizes = [16, 16], strides = [1, 1]} : vector<16x64xf32> to vector<16x16xf32>
    %cst_19 = arith.constant dense<0.000000e+00> : vector<48x16xf32>
    %62 = tpu.matmul %60, %61, %cst_19 {dimension_numbers = #tpu.dot_dimension_numbers<[1], [0], [0], [1], [0, 0, 1, 1], [], []>} : vector<48x16xf32>, vector<16x16xf32>, vector<48x16xf32> -> vector<48x16xf32>
    %63 = vector.extract_strided_slice %36 {offsets = [0, 48], sizes = [1, 16], strides = [1, 1]} : vector<1x64xf32> to vector<1x16xf32>
    %64 = vector.broadcast %63 : vector<1x16xf32> to vector<48x16xf32>
    %65 = arith.addf %62, %64 : vector<48x16xf32>
    %66 = arith.addf %0, %65 : vector<48x16xf32>
    %67 = vector.extract_strided_slice %1 {offsets = [2, 0], sizes = [1, 16], strides = [1, 1]} : vector<6x16xf32> to vector<1x16xf32>
    %68 = vector.extract_strided_slice %1 {offsets = [3, 0], sizes = [1, 16], strides = [1, 1]} : vector<6x16xf32> to vector<1x16xf32>
    %cst_20 = arith.constant dense<0.000000e+00> : vector<48xf32>
    %69 = vector.multi_reduction <add>, %66, %cst_20 [1] : vector<48x16xf32> to vector<48xf32>
    %70 = vector.shape_cast %69 : vector<48xf32> to vector<48x1xf32>
    %cst_21 = arith.constant 1.600000e+01 : f32
    %71 = vector.broadcast %cst_21 : f32 to vector<48x1xf32>
    %72 = arith.divf %70, %71 : vector<48x1xf32>
    %73 = vector.broadcast %72 : vector<48x1xf32> to vector<48x16xf32>
    %74 = arith.subf %66, %73 : vector<48x16xf32>
    %75 = arith.mulf %74, %74 : vector<48x16xf32>
    %cst_22 = arith.constant dense<0.000000e+00> : vector<48xf32>
    %76 = vector.multi_reduction <add>, %75, %cst_22 [1] : vector<48x16xf32> to vector<48xf32>
    %77 = vector.shape_cast %76 : vector<48xf32> to vector<48x1xf32>
    %cst_23 = arith.constant 1.600000e+01 : f32
    %78 = vector.broadcast %cst_23 : f32 to vector<48x1xf32>
    %79 = arith.divf %77, %78 : vector<48x1xf32>
    %80 = vector.broadcast %72 : vector<48x1xf32> to vector<48x16xf32>
    %81 = arith.subf %66, %80 : vector<48x16xf32>
    %cst_24 = arith.constant 9.99999974E-6 : f32
    %82 = vector.broadcast %cst_24 : f32 to vector<48x1xf32>
    %83 = arith.addf %79, %82 : vector<48x1xf32>
    %84 = math.rsqrt %83 : vector<48x1xf32>
    %85 = vector.broadcast %84 : vector<48x1xf32> to vector<48x16xf32>
    %86 = arith.mulf %81, %85 : vector<48x16xf32>
    %87 = vector.broadcast %67 : vector<1x16xf32> to vector<48x16xf32>
    %88 = arith.mulf %86, %87 : vector<48x16xf32>
    %89 = vector.broadcast %68 : vector<1x16xf32> to vector<48x16xf32>
    %90 = arith.addf %88, %89 : vector<48x16xf32>
    %c0_25 = arith.constant 0 : index
    %c0_26 = arith.constant 0 : index
    %91 = vector.load %arg6[%c0_25, %c0_26] : memref<16x64xf32, #tpu.memory_space<vmem>>, vector<16x64xf32>
    %cst_27 = arith.constant dense<0.000000e+00> : vector<48x64xf32>
    %92 = tpu.matmul %90, %91, %cst_27 {dimension_numbers = #tpu.dot_dimension_numbers<[1], [0], [0], [1], [0, 0, 1, 1], [], []>} : vector<48x16xf32>, vector<16x64xf32>, vector<48x64xf32> -> vector<48x64xf32>
    %c0_28 = arith.constant 0 : index
    %c0_29 = arith.constant 0 : index
    %93 = vector.load %arg7[%c0_28, %c0_29] : memref<1x64xf32, #tpu.memory_space<vmem>>, vector<1x64xf32>
    %94 = vector.broadcast %93 : vector<1x64xf32> to vector<48x64xf32>
    %95 = arith.addf %92, %94 : vector<48x64xf32>
    %cst_30 = arith.constant 1.702000e+00 : f32
    %96 = vector.broadcast %cst_30 : f32 to vector<48x64xf32>
    %97 = arith.mulf %96, %95 : vector<48x64xf32>
    %cst_31 = arith.constant 0.000000e+00 : f32
    %98 = vector.broadcast %cst_31 : f32 to vector<48x64xf32>
    %99 = arith.subf %98, %97 : vector<48x64xf32>
    %100 = math.exp %99 : vector<48x64xf32>
    %cst_32 = arith.constant 1.000000e+00 : f32
    %101 = vector.broadcast %cst_32 : f32 to vector<48x64xf32>
    %102 = arith.addf %101, %100 : vector<48x64xf32>
    %cst_33 = arith.constant 1.000000e+00 : f32
    %103 = vector.broadcast %cst_33 : f32 to vector<48x64xf32>
    %104 = arith.divf %103, %102 : vector<48x64xf32>
    %105 = arith.mulf %95, %104 : vector<48x64xf32>
    %c0_34 = arith.constant 0 : index
    %c0_35 = arith.constant 0 : index
    %106 = vector.load %arg8[%c0_34, %c0_35] : memref<64x16xf32, #tpu.memory_space<vmem>>, vector<64x16xf32>
    %cst_36 = arith.constant dense<0.000000e+00> : vector<48x16xf32>
    %107 = tpu.matmul %105, %106, %cst_36 {dimension_numbers = #tpu.dot_dimension_numbers<[1], [0], [0], [1], [0, 0, 1, 1], [], []>} : vector<48x64xf32>, vector<64x16xf32>, vector<48x16xf32> -> vector<48x16xf32>
    %c0_37 = arith.constant 0 : index
    %c0_38 = arith.constant 0 : index
    %108 = vector.load %arg9[%c0_37, %c0_38] : memref<1x16xf32, #tpu.memory_space<vmem>>, vector<1x16xf32>
    %109 = vector.broadcast %108 : vector<1x16xf32> to vector<48x16xf32>
    %110 = arith.addf %107, %109 : vector<48x16xf32>
    %111 = arith.addf %66, %110 : vector<48x16xf32>
    %112 = vector.extract_strided_slice %1 {offsets = [4, 0], sizes = [1, 16], strides = [1, 1]} : vector<6x16xf32> to vector<1x16xf32>
    %113 = vector.extract_strided_slice %1 {offsets = [5, 0], sizes = [1, 16], strides = [1, 1]} : vector<6x16xf32> to vector<1x16xf32>
    %cst_39 = arith.constant dense<0.000000e+00> : vector<48xf32>
    %114 = vector.multi_reduction <add>, %111, %cst_39 [1] : vector<48x16xf32> to vector<48xf32>
    %115 = vector.shape_cast %114 : vector<48xf32> to vector<48x1xf32>
    %cst_40 = arith.constant 1.600000e+01 : f32
    %116 = vector.broadcast %cst_40 : f32 to vector<48x1xf32>
    %117 = arith.divf %115, %116 : vector<48x1xf32>
    %118 = vector.broadcast %117 : vector<48x1xf32> to vector<48x16xf32>
    %119 = arith.subf %111, %118 : vector<48x16xf32>
    %120 = arith.mulf %119, %119 : vector<48x16xf32>
    %cst_41 = arith.constant dense<0.000000e+00> : vector<48xf32>
    %121 = vector.multi_reduction <add>, %120, %cst_41 [1] : vector<48x16xf32> to vector<48xf32>
    %122 = vector.shape_cast %121 : vector<48xf32> to vector<48x1xf32>
    %cst_42 = arith.constant 1.600000e+01 : f32
    %123 = vector.broadcast %cst_42 : f32 to vector<48x1xf32>
    %124 = arith.divf %122, %123 : vector<48x1xf32>
    %125 = vector.broadcast %117 : vector<48x1xf32> to vector<48x16xf32>
    %126 = arith.subf %111, %125 : vector<48x16xf32>
    %cst_43 = arith.constant 9.99999974E-6 : f32
    %127 = vector.broadcast %cst_43 : f32 to vector<48x1xf32>
    %128 = arith.addf %124, %127 : vector<48x1xf32>
    %129 = math.rsqrt %128 : vector<48x1xf32>
    %130 = vector.broadcast %129 : vector<48x1xf32> to vector<48x16xf32>
    %131 = arith.mulf %126, %130 : vector<48x16xf32>
    %132 = vector.broadcast %112 : vector<1x16xf32> to vector<48x16xf32>
    %133 = arith.mulf %131, %132 : vector<48x16xf32>
    %134 = vector.broadcast %113 : vector<1x16xf32> to vector<48x16xf32>
    %135 = arith.addf %133, %134 : vector<48x16xf32>
    %c0_44 = arith.constant 0 : index
    %c0_45 = arith.constant 0 : index
    %136 = vector.load %arg2[%c0_44, %c0_45] : memref<6x48xf32, #tpu.memory_space<vmem>>, vector<6x48xf32>
    %cst_46 = arith.constant dense<0.000000e+00> : vector<6x16xf32>
    %137 = tpu.matmul %136, %135, %cst_46 {dimension_numbers = #tpu.dot_dimension_numbers<[1], [0], [0], [1], [0, 0, 1, 1], [], []>} : vector<6x48xf32>, vector<48x16xf32>, vector<6x16xf32> -> vector<6x16xf32>
    %c0_47 = arith.constant 0 : index
    %c0_48 = arith.constant 0 : index
    %138 = vector.load %arg10[%c0_47, %c0_48] : memref<16x32xf32, #tpu.memory_space<vmem>>, vector<16x32xf32>
    %cst_49 = arith.constant dense<0.000000e+00> : vector<6x32xf32>
    %139 = tpu.matmul %137, %138, %cst_49 {dimension_numbers = #tpu.dot_dimension_numbers<[1], [0], [0], [1], [0, 0, 1, 1], [], []>} : vector<6x16xf32>, vector<16x32xf32>, vector<6x32xf32> -> vector<6x32xf32>
    %c0_50 = arith.constant 0 : index
    %c0_51 = arith.constant 0 : index
    %140 = vector.load %arg11[%c0_50, %c0_51] : memref<8x32xf32, #tpu.memory_space<vmem>>, vector<8x32xf32>
    %141 = tpu.concatenate %140, %140 in 0 : vector<8x32xf32>, vector<8x32xf32> -> vector<16x32xf32>
    %c0_52 = arith.constant 0 : index
    %c0_53 = arith.constant 0 : index
    %142 = vector.load %arg12[%c0_52, %c0_53] : memref<16x32xf32, #tpu.memory_space<vmem>>, vector<16x32xf32>
    %c0_54 = arith.constant 0 : index
    %c0_55 = arith.constant 0 : index
    %143 = vector.load %arg13[%c0_54, %c0_55] : memref<16x32xf32, #tpu.memory_space<vmem>>, vector<16x32xf32>
    %144 = tpu.concatenate %142, %143 in 0 : vector<16x32xf32>, vector<16x32xf32> -> vector<32x32xf32>
    %145 = tpu.iota {dimensions = array<i32: 0>} : vector<16x32xi32>
    %146 = tpu.iota {dimensions = array<i32: 1>} : vector<16x32xi32>
    %c8_i32 = arith.constant 8 : i32
    %147 = vector.broadcast %c8_i32 : i32 to vector<16x32xi32>
    %148 = arith.cmpi slt, %145, %147 : vector<16x32xi32>
    %c16_i32 = arith.constant 16 : i32
    %149 = vector.broadcast %c16_i32 : i32 to vector<16x32xi32>
    %150 = arith.cmpi slt, %146, %149 : vector<16x32xi32>
    %151 = arith.andi %148, %150 : vector<16x32xi1>
    %c8_i32_56 = arith.constant 8 : i32
    %152 = vector.broadcast %c8_i32_56 : i32 to vector<16x32xi32>
    %153 = arith.cmpi sge, %145, %152 : vector<16x32xi32>
    %c16_i32_57 = arith.constant 16 : i32
    %154 = vector.broadcast %c16_i32_57 : i32 to vector<16x32xi32>
    %155 = arith.cmpi sge, %146, %154 : vector<16x32xi32>
    %156 = arith.andi %153, %155 : vector<16x32xi1>
    %157 = arith.ori %151, %156 : vector<16x32xi1>
    %c0_58 = arith.constant 0 : index
    %c0_59 = arith.constant 0 : index
    %158 = vector.load %arg14[%c0_58, %c0_59] : memref<32x128xf32, #tpu.memory_space<vmem>>, vector<32x128xf32>
    %c0_60 = arith.constant 0 : index
    %c0_61 = arith.constant 0 : index
    %159 = vector.load %arg15[%c0_60, %c0_61] : memref<1x128xf32, #tpu.memory_space<vmem>>, vector<1x128xf32>
    %160 = tpu.concatenate %141, %144 in 0 : vector<16x32xf32>, vector<32x32xf32> -> vector<48x32xf32>
    %161 = vector.extract_strided_slice %158 {offsets = [0, 0], sizes = [32, 96], strides = [1, 1]} : vector<32x128xf32> to vector<32x96xf32>
    %cst_62 = arith.constant dense<0.000000e+00> : vector<48x96xf32>
    %162 = tpu.matmul %160, %161, %cst_62 {dimension_numbers = #tpu.dot_dimension_numbers<[1], [0], [0], [1], [0, 0, 1, 1], [], []>} : vector<48x32xf32>, vector<32x96xf32>, vector<48x96xf32> -> vector<48x96xf32>
    %163 = vector.extract_strided_slice %159 {offsets = [0, 0], sizes = [1, 96], strides = [1, 1]} : vector<1x128xf32> to vector<1x96xf32>
    %164 = vector.broadcast %163 : vector<1x96xf32> to vector<48x96xf32>
    %165 = arith.addf %162, %164 : vector<48x96xf32>
    %166 = vector.extract_strided_slice %165 {offsets = [0, 0], sizes = [16, 32], strides = [1, 1]} : vector<48x96xf32> to vector<16x32xf32>
    %167 = vector.extract_strided_slice %165 {offsets = [16, 32], sizes = [32, 32], strides = [1, 1]} : vector<48x96xf32> to vector<32x32xf32>
    %168 = vector.extract_strided_slice %165 {offsets = [16, 64], sizes = [32, 32], strides = [1, 1]} : vector<48x96xf32> to vector<32x32xf32>
    %cst_63 = arith.constant 0.176776692 : f32
    %169 = vector.broadcast %cst_63 : f32 to vector<16x32xf32>
    %170 = arith.mulf %166, %169 : vector<16x32xf32>
    %cst_64 = arith.constant dense<0.000000e+00> : vector<16x32xf32>
    %171 = tpu.matmul %170, %167, %cst_64 {dimension_numbers = #tpu.dot_dimension_numbers<[1], [1], [0], [0], [0, 0, 1, 0], [], []>} : vector<16x32xf32>, vector<32x32xf32>, vector<16x32xf32> -> vector<16x32xf32>
    %cst_65 = arith.constant -1.000000e+30 : f32
    %172 = vector.broadcast %cst_65 : f32 to vector<16x32xf32>
    %173 = arith.select %157, %171, %172 : vector<16x32xi1>, vector<16x32xf32>
    %cst_66 = arith.constant dense<0xFF800000> : vector<16xf32>
    %174 = vector.multi_reduction <maximumf>, %173, %cst_66 [1] : vector<16x32xf32> to vector<16xf32>
    %175 = vector.shape_cast %174 : vector<16xf32> to vector<16x1xf32>
    %176 = vector.broadcast %175 : vector<16x1xf32> to vector<16x32xf32>
    %177 = arith.subf %173, %176 : vector<16x32xf32>
    %178 = math.exp %177 : vector<16x32xf32>
    %cst_67 = arith.constant dense<0.000000e+00> : vector<16xf32>
    %179 = vector.multi_reduction <add>, %178, %cst_67 [1] : vector<16x32xf32> to vector<16xf32>
    %180 = vector.shape_cast %179 : vector<16xf32> to vector<16x1xf32>
    %181 = tpu.reciprocal %180 {approx = true} : vector<16x1xf32> -> vector<16x1xf32>
    %182 = vector.broadcast %181 : vector<16x1xf32> to vector<16x32xf32>
    %183 = arith.mulf %178, %182 : vector<16x32xf32>
    %cst_68 = arith.constant dense<0.000000e+00> : vector<16x32xf32>
    %184 = tpu.matmul %183, %168, %cst_68 {dimension_numbers = #tpu.dot_dimension_numbers<[1], [0], [0], [1], [0, 0, 1, 1], [], []>} : vector<16x32xf32>, vector<32x32xf32>, vector<16x32xf32> -> vector<16x32xf32>
    %185 = vector.extract_strided_slice %158 {offsets = [0, 96], sizes = [32, 32], strides = [1, 1]} : vector<32x128xf32> to vector<32x32xf32>
    %cst_69 = arith.constant dense<0.000000e+00> : vector<16x32xf32>
    %186 = tpu.matmul %184, %185, %cst_69 {dimension_numbers = #tpu.dot_dimension_numbers<[1], [0], [0], [1], [0, 0, 1, 1], [], []>} : vector<16x32xf32>, vector<32x32xf32>, vector<16x32xf32> -> vector<16x32xf32>
    %187 = vector.extract_strided_slice %159 {offsets = [0, 96], sizes = [1, 32], strides = [1, 1]} : vector<1x128xf32> to vector<1x32xf32>
    %188 = vector.broadcast %187 : vector<1x32xf32> to vector<16x32xf32>
    %189 = arith.addf %186, %188 : vector<16x32xf32>
    %c0_70 = arith.constant 0 : index
    %c0_71 = arith.constant 0 : index
    %190 = vector.load %arg18[%c0_70, %c0_71] : memref<2x32xf32, #tpu.memory_space<vmem>>, vector<2x32xf32>
    %191 = arith.addf %189, %141 : vector<16x32xf32>
    %192 = vector.extract_strided_slice %190 {offsets = [0, 0], sizes = [1, 32], strides = [1, 1]} : vector<2x32xf32> to vector<1x32xf32>
    %193 = vector.extract_strided_slice %190 {offsets = [1, 0], sizes = [1, 32], strides = [1, 1]} : vector<2x32xf32> to vector<1x32xf32>
    %cst_72 = arith.constant dense<0.000000e+00> : vector<16xf32>
    %194 = vector.multi_reduction <add>, %191, %cst_72 [1] : vector<16x32xf32> to vector<16xf32>
    %195 = vector.shape_cast %194 : vector<16xf32> to vector<16x1xf32>
    %cst_73 = arith.constant 3.200000e+01 : f32
    %196 = vector.broadcast %cst_73 : f32 to vector<16x1xf32>
    %197 = arith.divf %195, %196 : vector<16x1xf32>
    %198 = vector.broadcast %197 : vector<16x1xf32> to vector<16x32xf32>
    %199 = arith.subf %191, %198 : vector<16x32xf32>
    %200 = arith.mulf %199, %199 : vector<16x32xf32>
    %cst_74 = arith.constant dense<0.000000e+00> : vector<16xf32>
    %201 = vector.multi_reduction <add>, %200, %cst_74 [1] : vector<16x32xf32> to vector<16xf32>
    %202 = vector.shape_cast %201 : vector<16xf32> to vector<16x1xf32>
    %cst_75 = arith.constant 3.200000e+01 : f32
    %203 = vector.broadcast %cst_75 : f32 to vector<16x1xf32>
    %204 = arith.divf %202, %203 : vector<16x1xf32>
    %205 = vector.broadcast %197 : vector<16x1xf32> to vector<16x32xf32>
    %206 = arith.subf %191, %205 : vector<16x32xf32>
    %cst_76 = arith.constant 9.99999974E-6 : f32
    %207 = vector.broadcast %cst_76 : f32 to vector<16x1xf32>
    %208 = arith.addf %204, %207 : vector<16x1xf32>
    %209 = math.rsqrt %208 : vector<16x1xf32>
    %210 = vector.broadcast %209 : vector<16x1xf32> to vector<16x32xf32>
    %211 = arith.mulf %206, %210 : vector<16x32xf32>
    %212 = vector.broadcast %192 : vector<1x32xf32> to vector<16x32xf32>
    %213 = arith.mulf %211, %212 : vector<16x32xf32>
    %214 = vector.broadcast %193 : vector<1x32xf32> to vector<16x32xf32>
    %215 = arith.addf %213, %214 : vector<16x32xf32>
    %c0_77 = arith.constant 0 : index
    %c0_78 = arith.constant 0 : index
    %216 = vector.load %arg19[%c0_77, %c0_78] : memref<32x32xf32, #tpu.memory_space<vmem>>, vector<32x32xf32>
    %cst_79 = arith.constant dense<0.000000e+00> : vector<16x32xf32>
    %217 = tpu.matmul %215, %216, %cst_79 {dimension_numbers = #tpu.dot_dimension_numbers<[1], [0], [0], [1], [0, 0, 1, 1], [], []>} : vector<16x32xf32>, vector<32x32xf32>, vector<16x32xf32> -> vector<16x32xf32>
    %c0_80 = arith.constant 0 : index
    %c0_81 = arith.constant 0 : index
    %218 = vector.load %arg20[%c0_80, %c0_81] : memref<1x32xf32, #tpu.memory_space<vmem>>, vector<1x32xf32>
    %219 = vector.broadcast %218 : vector<1x32xf32> to vector<16x32xf32>
    %220 = arith.addf %217, %219 : vector<16x32xf32>
    %221 = vector.extract_strided_slice %220 {offsets = [0, 0], sizes = [16, 16], strides = [1, 1]} : vector<16x32xf32> to vector<16x16xf32>
    %222 = math.tanh %221 : vector<16x16xf32>
    %223 = vector.extract_strided_slice %220 {offsets = [0, 16], sizes = [16, 16], strides = [1, 1]} : vector<16x32xf32> to vector<16x16xf32>
    %cst_82 = arith.constant 0.000000e+00 : f32
    %224 = vector.broadcast %cst_82 : f32 to vector<16x16xf32>
    %225 = arith.subf %224, %223 : vector<16x16xf32>
    %226 = math.exp %225 : vector<16x16xf32>
    %cst_83 = arith.constant 1.000000e+00 : f32
    %227 = vector.broadcast %cst_83 : f32 to vector<16x16xf32>
    %228 = arith.addf %227, %226 : vector<16x16xf32>
    %cst_84 = arith.constant 1.000000e+00 : f32
    %229 = vector.broadcast %cst_84 : f32 to vector<16x16xf32>
    %230 = arith.divf %229, %228 : vector<16x16xf32>
    %231 = arith.mulf %222, %230 : vector<16x16xf32>
    %c0_85 = arith.constant 0 : index
    %c0_86 = arith.constant 0 : index
    %232 = vector.load %arg21[%c0_85, %c0_86] : memref<16x1xf32, #tpu.memory_space<vmem>>, vector<16x1xf32>
    %cst_87 = arith.constant dense<0.000000e+00> : vector<16x1xf32>
    %233 = tpu.matmul %231, %232, %cst_87 {dimension_numbers = #tpu.dot_dimension_numbers<[1], [0], [0], [1], [0, 0, 1, 1], [], []>} : vector<16x16xf32>, vector<16x1xf32>, vector<16x1xf32> -> vector<16x1xf32>
    %c0_88 = arith.constant 0 : index
    %c0_89 = arith.constant 0 : index
    %234 = vector.load %arg22[%c0_88, %c0_89] : memref<1x1xf32, #tpu.memory_space<vmem>>, vector<1x1xf32>
    %235 = vector.broadcast %234 : vector<1x1xf32> to vector<16x1xf32>
    %236 = arith.addf %233, %235 : vector<16x1xf32>
    %237 = vector.extract_strided_slice %236 {offsets = [0, 0], sizes = [8, 1], strides = [1, 1]} : vector<16x1xf32> to vector<8x1xf32>
    %238 = vector.extract_strided_slice %215 {offsets = [0, 0], sizes = [8, 32], strides = [1, 1]} : vector<16x32xf32> to vector<8x32xf32>
    %cst_90 = arith.constant dense<0xFF800000> : vector<1xf32>
    %239 = vector.multi_reduction <maximumf>, %237, %cst_90 [0] : vector<8x1xf32> to vector<1xf32>
    %240 = vector.shape_cast %239 : vector<1xf32> to vector<1x1xf32>
    %241 = vector.broadcast %240 : vector<1x1xf32> to vector<8x1xf32>
    %242 = arith.subf %237, %241 : vector<8x1xf32>
    %243 = math.exp %242 : vector<8x1xf32>
    %cst_91 = arith.constant dense<0.000000e+00> : vector<1xf32>
    %244 = vector.multi_reduction <add>, %243, %cst_91 [0] : vector<8x1xf32> to vector<1xf32>
    %245 = vector.shape_cast %244 : vector<1xf32> to vector<1x1xf32>
    %246 = tpu.reciprocal %245 {approx = true} : vector<1x1xf32> -> vector<1x1xf32>
    %247 = vector.broadcast %246 : vector<1x1xf32> to vector<8x1xf32>
    %248 = arith.mulf %243, %247 : vector<8x1xf32>
    %249 = vector.broadcast %248 : vector<8x1xf32> to vector<8x32xf32>
    %250 = arith.mulf %249, %238 : vector<8x32xf32>
    %cst_92 = arith.constant dense<0.000000e+00> : vector<32xf32>
    %251 = vector.multi_reduction <add>, %250, %cst_92 [0] : vector<8x32xf32> to vector<32xf32>
    %252 = vector.shape_cast %251 : vector<32xf32> to vector<1x32xf32>
    %253 = vector.extract_strided_slice %236 {offsets = [8, 0], sizes = [8, 1], strides = [1, 1]} : vector<16x1xf32> to vector<8x1xf32>
    %254 = vector.extract_strided_slice %215 {offsets = [8, 0], sizes = [8, 32], strides = [1, 1]} : vector<16x32xf32> to vector<8x32xf32>
    %cst_93 = arith.constant dense<0xFF800000> : vector<1xf32>
    %255 = vector.multi_reduction <maximumf>, %253, %cst_93 [0] : vector<8x1xf32> to vector<1xf32>
    %256 = vector.shape_cast %255 : vector<1xf32> to vector<1x1xf32>
    %257 = vector.broadcast %256 : vector<1x1xf32> to vector<8x1xf32>
    %258 = arith.subf %253, %257 : vector<8x1xf32>
    %259 = math.exp %258 : vector<8x1xf32>
    %cst_94 = arith.constant dense<0.000000e+00> : vector<1xf32>
    %260 = vector.multi_reduction <add>, %259, %cst_94 [0] : vector<8x1xf32> to vector<1xf32>
    %261 = vector.shape_cast %260 : vector<1xf32> to vector<1x1xf32>
    %262 = tpu.reciprocal %261 {approx = true} : vector<1x1xf32> -> vector<1x1xf32>
    %263 = vector.broadcast %262 : vector<1x1xf32> to vector<8x1xf32>
    %264 = arith.mulf %259, %263 : vector<8x1xf32>
    %265 = vector.broadcast %264 : vector<8x1xf32> to vector<8x32xf32>
    %266 = arith.mulf %265, %254 : vector<8x32xf32>
    %cst_95 = arith.constant dense<0.000000e+00> : vector<32xf32>
    %267 = vector.multi_reduction <add>, %266, %cst_95 [0] : vector<8x32xf32> to vector<32xf32>
    %268 = vector.shape_cast %267 : vector<32xf32> to vector<1x32xf32>
    %269 = vector.extract_strided_slice %215 {offsets = [0, 0], sizes = [8, 32], strides = [1, 1]} : vector<16x32xf32> to vector<8x32xf32>
    %c0_96 = arith.constant 0 : index
    %c0_97 = arith.constant 0 : index
    %270 = vector.load %arg12[%c0_96, %c0_97] : memref<16x32xf32, #tpu.memory_space<vmem>>, vector<16x32xf32>
    %271 = vector.extract_strided_slice %215 {offsets = [8, 0], sizes = [8, 32], strides = [1, 1]} : vector<16x32xf32> to vector<8x32xf32>
    %c0_98 = arith.constant 0 : index
    %c0_99 = arith.constant 0 : index
    %272 = vector.load %arg13[%c0_98, %c0_99] : memref<16x32xf32, #tpu.memory_space<vmem>>, vector<16x32xf32>
    %273 = tpu.concatenate %269, %270, %271, %272 in 0 : vector<8x32xf32>, vector<16x32xf32>, vector<8x32xf32>, vector<16x32xf32> -> vector<48x32xf32>
    %274 = tpu.iota {dimensions = array<i32: 0>} : vector<6x48xi32>
    %275 = tpu.iota {dimensions = array<i32: 1>} : vector<6x48xi32>
    %c3_i32_100 = arith.constant 3 : i32
    %276 = vector.broadcast %c3_i32_100 : i32 to vector<6x48xi32>
    %277 = arith.cmpi slt, %274, %276 : vector<6x48xi32>
    %c24_i32 = arith.constant 24 : i32
    %278 = vector.broadcast %c24_i32 : i32 to vector<6x48xi32>
    %279 = arith.cmpi slt, %275, %278 : vector<6x48xi32>
    %280 = arith.andi %277, %279 : vector<6x48xi1>
    %c3_i32_101 = arith.constant 3 : i32
    %281 = vector.broadcast %c3_i32_101 : i32 to vector<6x48xi32>
    %282 = arith.cmpi sge, %274, %281 : vector<6x48xi32>
    %c24_i32_102 = arith.constant 24 : i32
    %283 = vector.broadcast %c24_i32_102 : i32 to vector<6x48xi32>
    %284 = arith.cmpi sge, %275, %283 : vector<6x48xi32>
    %285 = arith.andi %282, %284 : vector<6x48xi1>
    %286 = arith.ori %280, %285 : vector<6x48xi1>
    %c0_103 = arith.constant 0 : index
    %c0_104 = arith.constant 0 : index
    %287 = vector.load %arg16[%c0_103, %c0_104] : memref<32x128xf32, #tpu.memory_space<vmem>>, vector<32x128xf32>
    %c0_105 = arith.constant 0 : index
    %c0_106 = arith.constant 0 : index
    %288 = vector.load %arg17[%c0_105, %c0_106] : memref<1x128xf32, #tpu.memory_space<vmem>>, vector<1x128xf32>
    %289 = vector.extract_strided_slice %287 {offsets = [0, 0], sizes = [32, 32], strides = [1, 1]} : vector<32x128xf32> to vector<32x32xf32>
    %cst_107 = arith.constant dense<0.000000e+00> : vector<6x32xf32>
    %290 = tpu.matmul %139, %289, %cst_107 {dimension_numbers = #tpu.dot_dimension_numbers<[1], [0], [0], [1], [0, 0, 1, 1], [], []>} : vector<6x32xf32>, vector<32x32xf32>, vector<6x32xf32> -> vector<6x32xf32>
    %291 = vector.extract_strided_slice %288 {offsets = [0, 0], sizes = [1, 32], strides = [1, 1]} : vector<1x128xf32> to vector<1x32xf32>
    %292 = vector.broadcast %291 : vector<1x32xf32> to vector<6x32xf32>
    %293 = arith.addf %290, %292 : vector<6x32xf32>
    %294 = vector.extract_strided_slice %287 {offsets = [0, 32], sizes = [32, 32], strides = [1, 1]} : vector<32x128xf32> to vector<32x32xf32>
    %cst_108 = arith.constant dense<0.000000e+00> : vector<48x32xf32>
    %295 = tpu.matmul %273, %294, %cst_108 {dimension_numbers = #tpu.dot_dimension_numbers<[1], [0], [0], [1], [0, 0, 1, 1], [], []>} : vector<48x32xf32>, vector<32x32xf32>, vector<48x32xf32> -> vector<48x32xf32>
    %296 = vector.extract_strided_slice %288 {offsets = [0, 32], sizes = [1, 32], strides = [1, 1]} : vector<1x128xf32> to vector<1x32xf32>
    %297 = vector.broadcast %296 : vector<1x32xf32> to vector<48x32xf32>
    %298 = arith.addf %295, %297 : vector<48x32xf32>
    %299 = vector.extract_strided_slice %287 {offsets = [0, 64], sizes = [32, 32], strides = [1, 1]} : vector<32x128xf32> to vector<32x32xf32>
    %cst_109 = arith.constant dense<0.000000e+00> : vector<48x32xf32>
    %300 = tpu.matmul %273, %299, %cst_109 {dimension_numbers = #tpu.dot_dimension_numbers<[1], [0], [0], [1], [0, 0, 1, 1], [], []>} : vector<48x32xf32>, vector<32x32xf32>, vector<48x32xf32> -> vector<48x32xf32>
    %301 = vector.extract_strided_slice %288 {offsets = [0, 64], sizes = [1, 32], strides = [1, 1]} : vector<1x128xf32> to vector<1x32xf32>
    %302 = vector.broadcast %301 : vector<1x32xf32> to vector<48x32xf32>
    %303 = arith.addf %300, %302 : vector<48x32xf32>
    %cst_110 = arith.constant 0.176776692 : f32
    %304 = vector.broadcast %cst_110 : f32 to vector<6x32xf32>
    %305 = arith.mulf %293, %304 : vector<6x32xf32>
    %cst_111 = arith.constant dense<0.000000e+00> : vector<6x48xf32>
    %306 = tpu.matmul %305, %298, %cst_111 {dimension_numbers = #tpu.dot_dimension_numbers<[1], [1], [0], [0], [0, 0, 1, 0], [], []>} : vector<6x32xf32>, vector<48x32xf32>, vector<6x48xf32> -> vector<6x48xf32>
    %cst_112 = arith.constant -1.000000e+30 : f32
    %307 = vector.broadcast %cst_112 : f32 to vector<6x48xf32>
    %308 = arith.select %286, %306, %307 : vector<6x48xi1>, vector<6x48xf32>
    %cst_113 = arith.constant dense<0xFF800000> : vector<6xf32>
    %309 = vector.multi_reduction <maximumf>, %308, %cst_113 [1] : vector<6x48xf32> to vector<6xf32>
    %310 = vector.shape_cast %309 : vector<6xf32> to vector<6x1xf32>
    %311 = vector.broadcast %310 : vector<6x1xf32> to vector<6x48xf32>
    %312 = arith.subf %308, %311 : vector<6x48xf32>
    %313 = math.exp %312 : vector<6x48xf32>
    %cst_114 = arith.constant dense<0.000000e+00> : vector<6xf32>
    %314 = vector.multi_reduction <add>, %313, %cst_114 [1] : vector<6x48xf32> to vector<6xf32>
    %315 = vector.shape_cast %314 : vector<6xf32> to vector<6x1xf32>
    %316 = tpu.reciprocal %315 {approx = true} : vector<6x1xf32> -> vector<6x1xf32>
    %317 = vector.broadcast %316 : vector<6x1xf32> to vector<6x48xf32>
    %318 = arith.mulf %313, %317 : vector<6x48xf32>
    %cst_115 = arith.constant dense<0.000000e+00> : vector<6x32xf32>
    %319 = tpu.matmul %318, %303, %cst_115 {dimension_numbers = #tpu.dot_dimension_numbers<[1], [0], [0], [1], [0, 0, 1, 1], [], []>} : vector<6x48xf32>, vector<48x32xf32>, vector<6x32xf32> -> vector<6x32xf32>
    %320 = vector.extract_strided_slice %287 {offsets = [0, 96], sizes = [32, 32], strides = [1, 1]} : vector<32x128xf32> to vector<32x32xf32>
    %cst_116 = arith.constant dense<0.000000e+00> : vector<6x32xf32>
    %321 = tpu.matmul %319, %320, %cst_116 {dimension_numbers = #tpu.dot_dimension_numbers<[1], [0], [0], [1], [0, 0, 1, 1], [], []>} : vector<6x32xf32>, vector<32x32xf32>, vector<6x32xf32> -> vector<6x32xf32>
    %322 = vector.extract_strided_slice %288 {offsets = [0, 96], sizes = [1, 32], strides = [1, 1]} : vector<1x128xf32> to vector<1x32xf32>
    %323 = vector.broadcast %322 : vector<1x32xf32> to vector<6x32xf32>
    %324 = arith.addf %321, %323 : vector<6x32xf32>
    %325 = arith.addf %324, %139 : vector<6x32xf32>
    %326 = vector.extract_strided_slice %325 {offsets = [0, 0], sizes = [3, 32], strides = [1, 1]} : vector<6x32xf32> to vector<3x32xf32>
    %cst_117 = arith.constant dense<0.000000e+00> : vector<1x3xf32>
    %327 = tpu.matmul %252, %326, %cst_117 {dimension_numbers = #tpu.dot_dimension_numbers<[1], [1], [0], [0], [0, 0, 1, 0], [], []>} : vector<1x32xf32>, vector<3x32xf32>, vector<1x3xf32> -> vector<1x3xf32>
    %328 = vector.extract_strided_slice %325 {offsets = [3, 0], sizes = [3, 32], strides = [1, 1]} : vector<6x32xf32> to vector<3x32xf32>
    %cst_118 = arith.constant dense<0.000000e+00> : vector<1x3xf32>
    %329 = tpu.matmul %268, %328, %cst_118 {dimension_numbers = #tpu.dot_dimension_numbers<[1], [1], [0], [0], [0, 0, 1, 0], [], []>} : vector<1x32xf32>, vector<3x32xf32>, vector<1x3xf32> -> vector<1x3xf32>
    %330 = arith.addf %327, %329 : vector<1x3xf32>
    %cst_119 = arith.constant dense<0xFF800000> : vector<1xf32>
    %331 = vector.multi_reduction <maximumf>, %330, %cst_119 [1] : vector<1x3xf32> to vector<1xf32>
    %332 = vector.shape_cast %331 : vector<1xf32> to vector<1x1xf32>
    %333 = vector.broadcast %332 : vector<1x1xf32> to vector<1x3xf32>
    %334 = arith.subf %330, %333 : vector<1x3xf32>
    %335 = math.exp %334 : vector<1x3xf32>
    %cst_120 = arith.constant dense<0.000000e+00> : vector<1xf32>
    %336 = vector.multi_reduction <add>, %335, %cst_120 [1] : vector<1x3xf32> to vector<1xf32>
    %337 = vector.shape_cast %336 : vector<1xf32> to vector<1x1xf32>
    %338 = vector.broadcast %332 : vector<1x1xf32> to vector<1x3xf32>
    %339 = arith.subf %330, %338 : vector<1x3xf32>
    %340 = math.log %337 : vector<1x1xf32>
    %341 = vector.broadcast %340 : vector<1x1xf32> to vector<1x3xf32>
    %342 = arith.subf %339, %341 : vector<1x3xf32>
    %343 = math.exp %342 : vector<1x3xf32>
    %c0_121 = arith.constant 0 : index
    %344 = memref.load %arg23[%c0_121] : memref<1xi32, #tpu.memory_space<smem>>
    %345 = tpu.iota {dimensions = array<i32: 1>} : vector<1x3xi32>
    %346 = vector.broadcast %344 : i32 to vector<1x3xi32>
    %347 = arith.cmpi eq, %345, %346 : vector<1x3xi32>
    %348 = arith.extui %347 : vector<1x3xi1> to vector<1x3xi32>
    %349 = arith.sitofp %348 : vector<1x3xi32> to vector<1x3xf32>
    %350 = arith.mulf %349, %342 : vector<1x3xf32>
    %cst_122 = arith.constant dense<0.000000e+00> : vector<1xf32>
    %351 = vector.multi_reduction <add>, %350, %cst_122 [1] : vector<1x3xf32> to vector<1xf32>
    %352 = vector.shape_cast %351 : vector<1xf32> to vector<1x1xf32>
    %cst_123 = arith.constant 0.000000e+00 : f32
    %353 = vector.broadcast %cst_123 : f32 to vector<1x1xf32>
    %354 = arith.subf %353, %352 : vector<1x1xf32>
    %cst_124 = arith.constant 0.000000e+00 : f32
    %355 = vector.broadcast %cst_124 : f32 to vector<8x128xf32>
    %c0_125 = arith.constant 0 : index
    %c0_126 = arith.constant 0 : index
    %356 = vector.load %arg24[%c0_125, %c0_126] : memref<8x128xf32, #tpu.memory_space<vmem>>, vector<8x128xf32>
    tpu.vector_store %arg24[%c0_125, %c0_126], %355 {strides = array<i32>} : memref<8x128xf32, #tpu.memory_space<vmem>>, vector<8x128xf32>,
    %c0_127 = arith.constant 0 : index
    %c0_128 = arith.constant 0 : index
    %357 = vector.load %arg24[%c0_127, %c0_128] : memref<8x128xf32, #tpu.memory_space<vmem>>, vector<1x3xf32>
    tpu.vector_store %arg24[%c0_127, %c0_128], %330 {strides = array<i32>} : memref<8x128xf32, #tpu.memory_space<vmem>>, vector<1x3xf32>,
    %c1 = arith.constant 1 : index
    %c0_129 = arith.constant 0 : index
    %358 = vector.load %arg24[%c1, %c0_129] : memref<8x128xf32, #tpu.memory_space<vmem>>, vector<1x3xf32>
    tpu.vector_store %arg24[%c1, %c0_129], %343 {strides = array<i32>} : memref<8x128xf32, #tpu.memory_space<vmem>>, vector<1x3xf32>,
    %c2 = arith.constant 2 : index
    %c0_130 = arith.constant 0 : index
    %359 = vector.load %arg24[%c2, %c0_130] : memref<8x128xf32, #tpu.memory_space<vmem>>, vector<1x1xf32>
    tpu.vector_store %arg24[%c2, %c0_130], %354 {strides = array<i32>} : memref<8x128xf32, #tpu.memory_space<vmem>>, vector<1x1xf32>,
    return
  }
  func.func @transform_0(%arg0: i32) -> (i32, i32) {
    %c0_i32 = arith.constant 0 : i32
    %c0_i32_0 = arith.constant 0 : i32
    %c0_i32_1 = arith.constant 0 : i32
    return %c0_i32, %c0_i32_0 : i32, i32
  }
  func.func @transform_1(%arg0: i32) -> (i32, i32) {
    %c0_i32 = arith.constant 0 : i32
    %c0_i32_0 = arith.constant 0 : i32
    %c0_i32_1 = arith.constant 0 : i32
    return %c0_i32, %c0_i32_0 : i32, i32
  }
  func.func @transform_2(%arg0: i32) -> (i32, i32) {
    %c0_i32 = arith.constant 0 : i32
    %c0_i32_0 = arith.constant 0 : i32
    %c0_i32_1 = arith.constant 0 : i32
    return %c0_i32, %c0_i32_0 : i32, i32
  }
  func.func @transform_3(%arg0: i32) -> (i32, i32) {
    %c0_i32 = arith.constant 0 : i32
    %c0_i32_0 = arith.constant 0 : i32
    %c0_i32_1 = arith.constant 0 : i32
    return %c0_i32, %c0_i32_0 : i32, i32
  }
  func.func @transform_4(%arg0: i32) -> (i32, i32) {
    %c0_i32 = arith.constant 0 : i32
    %c0_i32_0 = arith.constant 0 : i32
    %c0_i32_1 = arith.constant 0 : i32
    return %c0_i32, %c0_i32_0 : i32, i32
  }
  func.func @transform_5(%arg0: i32) -> (i32, i32) {
    %c0_i32 = arith.constant 0 : i32
    %c0_i32_0 = arith.constant 0 : i32
    %c0_i32_1 = arith.constant 0 : i32
    return %c0_i32, %c0_i32_0 : i32, i32
  }
  func.func @transform_6(%arg0: i32) -> (i32, i32) {
    %c0_i32 = arith.constant 0 : i32
    %c0_i32_0 = arith.constant 0 : i32
    %c0_i32_1 = arith.constant 0 : i32
    return %c0_i32, %c0_i32_0 : i32, i32
  }
  func.func @transform_7(%arg0: i32) -> (i32, i32) {
    %c0_i32 = arith.constant 0 : i32
    %c0_i32_0 = arith.constant 0 : i32
    %c0_i32_1 = arith.constant 0 : i32
    return %c0_i32, %c0_i32_0 : i32, i32
  }
  func.func @transform_8(%arg0: i32) -> (i32, i32) {
    %c0_i32 = arith.constant 0 : i32
    %c0_i32_0 = arith.constant 0 : i32
    %c0_i32_1 = arith.constant 0 : i32
    return %c0_i32, %c0_i32_0 : i32, i32
  }
  func.func @transform_9(%arg0: i32) -> (i32, i32) {
    %c0_i32 = arith.constant 0 : i32
    %c0_i32_0 = arith.constant 0 : i32
    %c0_i32_1 = arith.constant 0 : i32
    return %c0_i32, %c0_i32_0 : i32, i32
  }
  func.func @transform_10(%arg0: i32) -> (i32, i32) {
    %c0_i32 = arith.constant 0 : i32
    %c0_i32_0 = arith.constant 0 : i32
    %c0_i32_1 = arith.constant 0 : i32
    return %c0_i32, %c0_i32_0 : i32, i32
  }
  func.func @transform_11(%arg0: i32) -> (i32, i32) {
    %c0_i32 = arith.constant 0 : i32
    %c0_i32_0 = arith.constant 0 : i32
    %c0_i32_1 = arith.constant 0 : i32
    return %c0_i32, %c0_i32_0 : i32, i32
  }
  func.func @transform_12(%arg0: i32) -> (i32, i32) {
    %c0_i32 = arith.constant 0 : i32
    %c0_i32_0 = arith.constant 0 : i32
    %c0_i32_1 = arith.constant 0 : i32
    return %c0_i32, %c0_i32_0 : i32, i32
  }
  func.func @transform_13(%arg0: i32) -> (i32, i32) {
    %c0_i32 = arith.constant 0 : i32
    %c0_i32_0 = arith.constant 0 : i32
    %c0_i32_1 = arith.constant 0 : i32
    return %c0_i32, %c0_i32_0 : i32, i32
  }
  func.func @transform_14(%arg0: i32) -> (i32, i32) {
    %c0_i32 = arith.constant 0 : i32
    %c0_i32_0 = arith.constant 0 : i32
    %c0_i32_1 = arith.constant 0 : i32
    return %c0_i32, %c0_i32_0 : i32, i32
  }
  func.func @transform_15(%arg0: i32) -> (i32, i32) {
    %c0_i32 = arith.constant 0 : i32
    %c0_i32_0 = arith.constant 0 : i32
    %c0_i32_1 = arith.constant 0 : i32
    return %c0_i32, %c0_i32_0 : i32, i32
  }
  func.func @transform_16(%arg0: i32) -> (i32, i32) {
    %c0_i32 = arith.constant 0 : i32
    %c0_i32_0 = arith.constant 0 : i32
    %c0_i32_1 = arith.constant 0 : i32
    return %c0_i32, %c0_i32_0 : i32, i32
  }
  func.func @transform_17(%arg0: i32) -> (i32, i32) {
    %c0_i32 = arith.constant 0 : i32
    %c0_i32_0 = arith.constant 0 : i32
    %c0_i32_1 = arith.constant 0 : i32
    return %c0_i32, %c0_i32_0 : i32, i32
  }
  func.func @transform_18(%arg0: i32) -> (i32, i32) {
    %c0_i32 = arith.constant 0 : i32
    %c0_i32_0 = arith.constant 0 : i32
    %c0_i32_1 = arith.constant 0 : i32
    return %c0_i32, %c0_i32_0 : i32, i32
  }
  func.func @transform_19(%arg0: i32) -> (i32, i32) {
    %c0_i32 = arith.constant 0 : i32
    %c0_i32_0 = arith.constant 0 : i32
    %c0_i32_1 = arith.constant 0 : i32
    return %c0_i32, %c0_i32_0 : i32, i32
  }
  func.func @transform_20(%arg0: i32) -> (i32, i32) {
    %c0_i32 = arith.constant 0 : i32
    %c0_i32_0 = arith.constant 0 : i32
    %c0_i32_1 = arith.constant 0 : i32
    return %c0_i32, %c0_i32_0 : i32, i32
  }
  func.func @transform_21(%arg0: i32) -> (i32, i32) {
    %c0_i32 = arith.constant 0 : i32
    %c0_i32_0 = arith.constant 0 : i32
    %c0_i32_1 = arith.constant 0 : i32
    return %c0_i32, %c0_i32_0 : i32, i32
  }
  func.func @transform_22(%arg0: i32) -> i32 {
    %c0_i32 = arith.constant 0 : i32
    %c0_i32_0 = arith.constant 0 : i32
    return %c0_i32 : i32
  }
  func.func @transform_23(%arg0: i32) -> (i32, i32) {
    %c0_i32 = arith.constant 0 : i32
    %c0_i32_0 = arith.constant 0 : i32
    %c0_i32_1 = arith.constant 0 : i32
    return %c0_i32, %c0_i32_0 : i32, i32
  }
}

</mosaic_0001>

<bundles_post_ra>
// kernel: vila_mil_forward.1
= control target key start
LH: loop header
LB: loop body
LE: loop exit
PB: predicated region body
PF: predicated region fallthrough
CT: control target
= control target key end

     0   :  { %vm118_vm0 = vcmask 130048   ;;  %v84_v48 = vlaneseq  ;;  %s3963_s27 = smov 112   ;;  %vm495_vm8 = vcmask 392192   ;;  %s3965_s28 = smov 80   ;;  %s4819_s0 = inlined_call_operand.vmem [shape: f32[48,16], index: 0, kind: input, shape index: {}]   ;;  %s4820_s2 = inlined_call_operand.vmem [shape: f32[16,64], index: 2, kind: input, shape index: {}]   ;;  %s4821_s4 = inlined_call_operand.vmem [shape: f32[6,16], index: 4, kind: input, shape index: {}]   ;;  %s4822_s3 = inlined_call_operand.vmem [shape: f32[1,64], index: 3, kind: input, shape index: {}]   ;;  %s4823_s5 = inlined_call_operand.vmem [shape: f32[16,64], index: 5, kind: input, shape index: {}]   ;;  %s4824_s7 = inlined_call_operand.vmem [shape: f32[64,16], index: 7, kind: input, shape index: {}]   ;;  %s4825_s6 = inlined_call_operand.vmem [shape: f32[1,64], index: 6, kind: input, shape index: {}]   ;;  %s4826_s8 = inlined_call_operand.vmem [shape: f32[1,16], index: 8, kind: input, shape index: {}]   ;;  %s4827_s13 = inlined_call_operand.vmem [shape: f32[32,128], index: 13, kind: input, shape index: {}]   ;;  %s4828_s10 = inlined_call_operand.vmem [shape: f32[8,32], index: 10, kind: input, shape index: {}]   ;;  %s4829_s11 = inlined_call_operand.vmem [shape: f32[16,32], index: 11, kind: input, shape index: {}]   ;;  %s4830_s12 = inlined_call_operand.vmem [shape: f32[16,32], index: 12, kind: input, shape index: {}]   ;;  %s4831_s14 = inlined_call_operand.vmem [shape: f32[1,128], index: 14, kind: input, shape index: {}]   ;;  %s4832_s9 = inlined_call_operand.vmem [shape: f32[16,32], index: 9, kind: input, shape index: {}]   ;;  %s4833_s1 = inlined_call_operand.vmem [shape: f32[6,48], index: 1, kind: input, shape index: {}]   ;;  %s4834_s18 = inlined_call_operand.vmem [shape: f32[32,32], index: 18, kind: input, shape index: {}]   ;;  %s4835_s17 = inlined_call_operand.vmem [shape: f32[2,32], index: 17, kind: input, shape index: {}]   ;;  %s4836_s15 = inlined_call_operand.vmem [shape: f32[32,128], index: 15, kind: input, shape index: {}]   ;;  %s4837_s19 = inlined_call_operand.vmem [shape: f32[1,32], index: 19, kind: input, shape index: {}]   ;;  %s4838_s20 = inlined_call_operand.vmem [shape: f32[16,1], index: 20, kind: input, shape index: {}]   ;;  %s4839_s16 = inlined_call_operand.vmem [shape: f32[1,128], index: 16, kind: input, shape index: {}]   ;;  %s4840_s21 = inlined_call_operand.<no memory space> [shape: f32[1,1], index: 21, kind: input, shape index: {}]   ;;  %s4841_s23 = inlined_call_operand.vmem [shape: f32[8,128], index: 23, kind: output, shape index: {}]   ;;  %s4842_s22 = inlined_call_operand.<no memory space> [shape: s32[1], index: 22, kind: input, shape index: {}]  }
   0x1   :  { %4848 = sst [smem:[#allocation4_spill]] %s4819_s0  ;;  %vm3566_vm1 = vmpackc.low %vm118_vm0, %vm118_vm0 }
   0x2   :  { %4849 = sst [smem:[#allocation5_spill]] %s4820_s2  ;;  %s4856_s24 = sld [smem:[#allocation4_spill]]  ;;  %v4185_v54 = vshrl.u32 %v84_v48, 7 }
   0x3   :  { %4850 = sst [smem:[#allocation6_spill]] %s4821_s4 }
   0x4   :  { %4851 = sst [smem:[#allocation7_spill]] %s4822_s3  ;;  %v200_v61 = vsub.s32 0, %v4185_v54  ;;  %s4858_s2 = sld [smem:[#allocation6_spill]] }
   0x5   :  { %4852 = sst [smem:[#allocation8_spill]] %s4823_s5  ;;  %s4857_s5 = sld [smem:[#allocation5_spill]] }
   0x6   :  { %4853 = sst [smem:[#allocation9_spill]] %s4824_s7  ;;  %s4860_s0 = sld [smem:[#allocation8_spill]] }
   0x7   :  { %4854 = sst [smem:[#allocation10_spill]] %s4825_s6  ;;  %s4859_s6 = sld [smem:[#allocation7_spill]] }
   0x8   :  { %4855 = sst [smem:[#allocation11_spill]] %s4826_s8  ;;  %v4095_v0 = vld [vmem:[%s4856_s24] sm:$0xff]  ;;  %v4100_v1 = vld [vmem:[%s4856_s24 + $0x10] sm:$0xff]  ;;  %v4105_v2 = vld [vmem:[%s4856_s24 + $0x8] sm:$0xff]  ;;  %s3964_s8 = smov 96  }
   0x9   :  { %v119_v3 = vsel %vm118_vm0, %v4095_v0, 0.0  ;;  %v125_v4 = vsel %vm118_vm0, %v4100_v1, 0.0  ;;  %v4114_v5 = vld [vmem:[%s4856_s24 + $0x18] sm:$0xff]  ;;  %v122_v6 = vsel %vm118_vm0, %v4105_v2, 0.0  ;;  %v4123_v8 = vld [vmem:[%s4856_s24 + $0x20] sm:$0xff]  ;;  %v4128_v9 = vld [vmem:[%s4856_s24 + $0x28] sm:$0xff] }
   0xa   :  { %120 = vadd.xlane.f32.xlu0 %v119_v3  ;;  %126 = vadd.xlane.f32.xlu1 %v125_v4  ;;  %v128_v7 = vsel %vm118_vm0, %v4114_v5, 0.0  ;;  %v131_v10 = vsel %vm118_vm0, %v4123_v8, 0.0  ;;  %v134_v11 = vsel %vm118_vm0, %v4128_v9, 0.0  ;;  %v4191_v3 = vld [vmem:[%s4858_s2] sm:$0x3f]  ;;  %s4861_s7 = sld [smem:[#allocation9_spill]] }
   0xb   :  { %v4173_v42 = vld [vmem:[%s4857_s5] sm:$0xff]  ;;  %v4178_v43 = vld [vmem:[%s4857_s5 + $0x8] sm:$0xff]  ;;  %s4862_s3 = sld [smem:[#allocation10_spill]]  ;;  %s4863_s5 = sld [smem:[#allocation11_spill]] }
   0xc   :  { %v3769_v44 = vpack.i.bf16 %v4178_v43, %v4173_v42  ;;  %v3561_v45 = vpack.c.bf16 %v4178_v43, %v4173_v42 }
   0xe   :  { %123 = vadd.xlane.f32.xlu0 %v122_v6  ;;  %129 = vadd.xlane.f32.xlu1 %v128_v7  ;;  %v210_v6 = vsub.s32 1, %v4185_v54 }
   0xf   :  { %3562 = vmatprep.subr.bf16.mxu1 %v3561_v45 }
  0x10   :  { %3564 = vmatpush3.bf16.msra.mxu1 %v3561_v45 }
  0x12   :  { %132 = vadd.xlane.f32.xlu0 %v131_v10  ;;  %135 = vadd.xlane.f32.xlu1 %v134_v11  ;;  %v201_v10 = vrot.slane %v4191_v3, %v200_v61 }
  0x97   :  { %v121_v12 = vpop.xlane.xlu0 %120  ;;  %v127_v13 = vpop.xlane.xlu1 %126 }
  0x98   :  { %v138_v14 = vmul.f32 0.0625, %v121_v12  ;;  %v140_v15 = vmul.f32 0.0625, %v127_v13 }
  0x9a   :  { %v4135_v16 = vsub.f32 %v4095_v0, %v138_v14  ;;  %v4138_v17 = vsub.f32 %v4100_v1, %v140_v15  ;;  %v211_v14 = vrot.slane %v4191_v3, %v210_v6 }
  0x9b   :  { %v124_v18 = vpop.xlane.xlu0 %123  ;;  %v130_v19 = vpop.xlane.xlu1 %129 }
  0x9c   :  { %v139_v20 = vmul.f32 0.0625, %v124_v18  ;;  %v141_v21 = vmul.f32 0.0625, %v130_v19  ;;  %v150_v22 = vmul.f32 %v4135_v16, %v4135_v16  ;;  %v152_v23 = vmul.f32 %v4138_v17, %v4138_v17 }
  0x9e   :  { %v4145_v24 = vsub.f32 %v4105_v2, %v139_v20  ;;  %v4148_v25 = vsub.f32 %v4114_v5, %v141_v21  ;;  %v156_v26 = vsel %vm118_vm0, %v150_v22, 0.0  ;;  %v162_v29 = vsel %vm118_vm0, %v152_v23, 0.0 }
  0x9f   :  { %157 = vadd.xlane.f32.xlu0 %v156_v26  ;;  %v133_v27 = vpop.xlane.xlu0 %132  ;;  %v136_v28 = vpop.xlane.xlu1 %135 }
  0xa0   :  { %v142_v30 = vmul.f32 0.0625, %v133_v27  ;;  %v143_v31 = vmul.f32 0.0625, %v136_v28  ;;  %v151_v32 = vmul.f32 %v4145_v24, %v4145_v24  ;;  %v153_v33 = vmul.f32 %v4148_v25, %v4148_v25 }
  0xa2   :  { %v4157_v34 = vsub.f32 %v4123_v8, %v142_v30  ;;  %v4160_v35 = vsub.f32 %v4128_v9, %v143_v31  ;;  %v159_v36 = vsel %vm118_vm0, %v151_v32, 0.0  ;;  %v165_v37 = vsel %vm118_vm0, %v153_v33, 0.0 }
  0xa3   :  { %163 = vadd.xlane.f32.xlu0 %v162_v29  ;;  %160 = vadd.xlane.f32.xlu1 %v159_v36 }
  0xa4   :  { %v154_v38 = vmul.f32 %v4157_v34, %v4157_v34  ;;  %v155_v39 = vmul.f32 %v4160_v35, %v4160_v35 }
  0xa6   :  { %v168_v40 = vsel %vm118_vm0, %v154_v38, 0.0  ;;  %v171_v41 = vsel %vm118_vm0, %v155_v39, 0.0 }
  0xa7   :  { %166 = vadd.xlane.f32.xlu1 %v165_v37  ;;  %169 = vadd.xlane.f32.xlu0 %v168_v40 }
  0xab   :  { %172 = vadd.xlane.f32.xlu1 %v171_v41 }
 0x12c   :  { %v158_v46 = vpop.xlane.xlu0 %157 }
 0x12d   :  { %v174_v47 = vmul.f32 0.0625, %v158_v46 }
 0x12f   :  { %v180_v49 = vadd.f32 1e-05, %v174_v47 }
 0x130   :  { %v161_v50 = vpop.xlane.xlu1 %160  ;;  %v164_v51 = vpop.xlane.xlu0 %163 }
 0x131   :  { %3836 = vrsqrt.f32 %v180_v49  ;;  %v175_v52 = vmul.f32 0.0625, %v161_v50  ;;  %v176_v53 = vmul.f32 0.0625, %v164_v51 }
 0x133   :  { %v181_v55 = vadd.f32 1e-05, %v175_v52  ;;  %v182_v56 = vadd.f32 1e-05, %v176_v53 }
 0x134   :  { %v167_v57 = vpop.xlane.xlu1 %166  ;;  %v170_v58 = vpop.xlane.xlu0 %169 }
 0x135   :  { %3838 = vrsqrt.f32 %v181_v55  ;;  %v177_v59 = vmul.f32 0.0625, %v167_v57  ;;  %v178_v60 = vmul.f32 0.0625, %v170_v58 }
 0x136   :  { %3840 = vrsqrt.f32 %v182_v56 }
 0x137   :  { %v183_v62 = vadd.f32 1e-05, %v177_v59  ;;  %v184_v63 = vadd.f32 1e-05, %v178_v60 }
 0x138   :  { %v173_v4 = vpop.xlane.xlu1 %172 }
 0x139   :  { %3842 = vrsqrt.f32 %v183_v62  ;;  %v179_v7 = vmul.f32 0.0625, %v173_v4 }
 0x13a   :  { %3844 = vrsqrt.f32 %v184_v63 }
 0x13b   :  { %v3837_v11 = vpop.eup %3836  ;;  %v185_v12 = vadd.f32 1e-05, %v179_v7 }
 0x13c   :  { %v192_v13 = vmul.f32 %v3837_v11, %v4135_v16 }
 0x13d   :  { %3846 = vrsqrt.f32 %v185_v12 }
 0x13e   :  { %v202_v15 = vmul.f32 %v201_v10, %v192_v13 }
 0x13f   :  { %v3839_v18 = vpop.eup %3838 }
 0x140   :  { %v3841_v19 = vpop.eup %3840  ;;  %v212_v20 = vadd.f32 %v211_v14, %v202_v15  ;;  %v193_v21 = vmul.f32 %v3839_v18, %v4145_v24 }
 0x141   :  { %v194_v22 = vmul.f32 %v3841_v19, %v4138_v17 }
 0x142   :  { %3273 = vmatprep.mubr.msk.f32.mxu1 %vm118_vm0, %v212_v20  ;;  %v203_v23 = vmul.f32 %v201_v10, %v193_v21 }
 0x143   :  { %v3843_v26 = vpop.eup %3842  ;;  %v204_v27 = vmul.f32 %v201_v10, %v194_v22 }
 0x144   :  { %v3845_v28 = vpop.eup %3844  ;;  %v213_v16 = vadd.f32 %v211_v14, %v203_v23  ;;  %v195_v29 = vmul.f32 %v3843_v26, %v4148_v25  ;;  %v86_v23 = vadd.s32 8, %v4185_v54  ;;  %v4245_v26 = vand.u32 127, %v84_v48 }
 0x145   :  { %v214_v30 = vadd.f32 %v211_v14, %v204_v27  ;;  %v196_v31 = vmul.f32 %v3845_v28, %v4157_v34  ;;  %v4215_v34 = vld [vmem:[%s4859_s6] ss:$0 sm:$0xff]  ;;  %v89_v48 = vadd.s32 32, %v4185_v54 }
 0x146   :  { %3274 = vmatmul.mubr.msk.f32.vlgmr.msra.gmra.mrb[0].mxu1 %vm118_vm0, %v213_v16  ;;  %v205_v32 = vmul.f32 %v201_v10, %v195_v29  ;;  %v94_v27 = vshra.s32 %v86_v23, 3  ;;  %v99_v28 = vshra.s32 %v4245_v26, 3  ;;  %v93_v16 = vshra.s32 %v4185_v54, 3 }
 0x147   :  { %v3847_v33 = vpop.eup %3846  ;;  %3276 = vmatprep.mubr.msk.f32.mxu1 %vm118_vm0, %v214_v30  ;;  %v206_v24 = vmul.f32 %v201_v10, %v196_v31  ;;  %v87_v29 = vadd.s32 16, %v4185_v54  ;;  %v88_v30 = vadd.s32 24, %v4185_v54  ;;  %vm107_vm3 = vcmp.le.s32.totalorder %v4245_v26, %v86_v23 }
 0x148   :  { %v215_v17 = vadd.f32 %v211_v14, %v205_v32  ;;  %v197_v36 = vmul.f32 %v3847_v33, %v4160_v35  ;;  %vm101_vm2 = vcmp.eq.s32.totalorder %v94_v27, %v99_v28  ;;  %vm100_vm4 = vcmp.eq.s32.totalorder %v93_v16, %v99_v28 }
 0x149   :  { %v216_v37 = vadd.f32 %v211_v14, %v206_v24  ;;  %vm106_vm5 = vcmp.le.s32.totalorder %v4245_v26, %v4185_v54  ;;  %v95_v31 = vshra.s32 %v87_v29, 3  ;;  %v96_v32 = vshra.s32 %v88_v30, 3  ;;  %vm113_vm6 = vmand %vm101_vm2, %vm107_vm3 }
 0x14a   :  { %3277 = vmatmul.mubr.msk.f32.gmra.mrb[2].mxu1 %vm118_vm0, %v215_v17  ;;  %v207_v38 = vmul.f32 %v201_v10, %v197_v36  ;;  %v90_v33 = vadd.s32 40, %v4185_v54  ;;  %vm112_vm7 = vmand %vm100_vm4, %vm106_vm5  ;;  %vm108_vm10 = vcmp.le.s32.totalorder %v4245_v26, %v87_v29  ;;  %v97_v17 = vshra.s32 %v89_v48, 3 }
 0x14b   :  { %3279 = vmatprep.mubr.msk.f32.mxu1 %vm118_vm0, %v216_v37  ;;  %vm102_vm9 = vcmp.eq.s32.totalorder %v95_v31, %v99_v28  ;;  %vm103_vm11 = vcmp.eq.s32.totalorder %v96_v32, %v99_v28  ;;  %vm109_vm12 = vcmp.le.s32.totalorder %v4245_v26, %v88_v30  ;;  %vm110_vm15 = vcmp.le.s32.totalorder %v4245_v26, %v89_v48 }
 0x14c   :  { %v217_v25 = vadd.f32 %v211_v14, %v207_v38  ;;  %vm114_vm13 = vmand %vm102_vm9, %vm108_vm10  ;;  %vm104_vm14 = vcmp.eq.s32.totalorder %v97_v17, %v99_v28  ;;  %vm111_vm3 = vcmp.le.s32.totalorder %v4245_v26, %v90_v33  ;;  %vm3967_vm9 = vmmov 0  }
 0x14d   :  { %vm116_vm4 = vmand %vm104_vm14, %vm110_vm15  ;;  %vm2246_vm14 = vcmp.lt.s32.totalorder %v4245_v26, 24  ;;  %vm2248_vm15 = vcmp.ge.s32.totalorder %v4185_v54, 3 }
 0x14e   :  { %3280 = vmatmul.mubr.msk.f32.gmra.mrb[4].mxu1 %vm118_vm0, %v217_v25 }
 0x219   :  { %v3275_v39 = vpop.f32.mrb[0].mxu1 }
 0x21a   :  { %v317_v40 = vadd.f32 %v3275_v39, %v4215_v34  ;;  %v311_v41 = vpop.f32.mrb[1].mxu1  ;;  %v98_v39 = vshra.s32 %v90_v33, 3 }
 0x21b   :  { %v312_v35 = vadd.f32 %v4215_v34, %v311_v41 }
 0x21c   :  { %v341_v18 = vmul.f32 0.25, %v317_v40  ;;  %vm105_vm2 = vcmp.eq.s32.totalorder %v98_v39, %v99_v28 }
 0x21d   :  { %v340_v45 = vmul.f32 0.25, %v312_v35  ;;  %v3278_v46 = vpop.f32.mrb[2].mxu1  ;;  %v4219_v47 = vpack.i.bf16 %v317_v40, %v312_v35  ;;  %vm117_vm5 = vmand %vm105_vm2, %vm111_vm3 }
 0x21e   :  { %v327_v49 = vadd.f32 %v3278_v46, %v4215_v34  ;;  %v321_v50 = vpop.f32.mrb[3].mxu1 }
 0x21f   :  { %v322_v51 = vadd.f32 %v4215_v34, %v321_v50  ;;  %3740 = vrot.lane.b32.xlu0 %v4219_v47, %s3963_s27  ;;  %3294 = vmatprep.mubr.msk.f32.mxu1 %vm118_vm0, %v340_v45 }
 0x220   :  { %v343_v20 = vmul.f32 0.25, %v327_v49 }
 0x221   :  { %v3281_v52 = vpop.f32.mrb[4].mxu1  ;;  %v4226_v53 = vpack.i.bf16 %v327_v49, %v322_v51  ;;  %v342_v19 = vmul.f32 0.25, %v322_v51 }
 0x222   :  { %v337_v55 = vadd.f32 %v3281_v52, %v4215_v34  ;;  %v331_v56 = vpop.f32.mrb[5].mxu1 }
 0x223   :  { %v332_v57 = vadd.f32 %v4215_v34, %v331_v56  ;;  %3745 = vrot.lane.b32.xlu1 %v4226_v53, %s3963_s27 }
 0x224   :  { %v345_v22 = vmul.f32 0.25, %v337_v55 }
 0x225   :  { %v4232_v58 = vpack.i.bf16 %v337_v55, %v332_v57  ;;  %v344_v21 = vmul.f32 0.25, %v332_v57 }
 0x227   :  { %3750 = vrot.lane.b32.xlu1 %v4232_v58, %s3963_s27 }
 0x291   :  { %v3741_v59 = vpop.permute.xlu0 %3740 }
 0x292   :  { %v3743_v60 = vunpack.i.h.bf16 %v3741_v59  ;;  %v3742_v62 = vunpack.i.l.bf16 %v3741_v59 }
 0x294   :  { %v3565_v63 = vpack.c.bf16 %v3743_v60, %v3742_v62 }
 0x295   :  { %v3746_v4 = vpop.permute.xlu1 %3745 }
 0x296   :  { %v3748_v7 = vunpack.i.h.bf16 %v3746_v4  ;;  %v3747_v10 = vunpack.i.l.bf16 %v3746_v4  ;;  %3567 = vmatprep.subr.msk.bf16.mxu1 %vm3566_vm1, %v3565_v63 }
 0x297   :  { %3570 = vmatpush3.bf16.xpose.msk.msra.mxu1 %vm3566_vm1, %v3565_v63 }
 0x298   :  { %v3571_v11 = vpack.c.bf16 %v3748_v7, %v3747_v10 }
 0x299   :  { %v3751_v12 = vpop.permute.xlu1 %3750 }
 0x29a   :  { %v3753_v13 = vunpack.i.h.bf16 %v3751_v12  ;;  %v3752_v14 = vunpack.i.l.bf16 %v3751_v12  ;;  %3573 = vmatprep.subr.msk.bf16.mxu1 %vm3566_vm1, %v3571_v11 }
 0x29c   :  { %v3577_v15 = vpack.c.bf16 %v3753_v13, %v3752_v14 }
 0x29f   :  { %3576 = vmatpush3.bf16.xpose.msk.msra.mxu1 %vm3566_vm1, %v3571_v11 }
 0x2a0   :  { %3579 = vmatprep.subr.msk.bf16.mxu1 %vm3566_vm1, %v3577_v15 }
 0x2a7   :  { %3582 = vmatpush3.bf16.xpose.msk.msra.mxu1 %vm3566_vm1, %v3577_v15  ;;  %vm115_vm1 = vmand %vm103_vm11, %vm109_vm12  ;;  %vm1485_vm11 = vcmp.ge.s32.totalorder %v4245_v26, 16  ;;  %vm1480_vm12 = vcmp.lt.s32.totalorder %v4245_v26, 16 }
 0x2ae   :  { %3295 = vmatmul.mubr.msk.f32.vlgmr.msra.gmra.mrb[6].mxu1 %vm118_vm0, %v341_v18 }
 0x2af   :  { %3297 = vmatprep.mubr.msk.f32.mxu1 %vm118_vm0, %v342_v19 }
 0x2b2   :  { %3298 = vmatmul.mubr.msk.f32.gmra.mrb[8].mxu1 %vm118_vm0, %v343_v20 }
 0x2b3   :  { %3300 = vmatprep.mubr.msk.f32.mxu1 %vm118_vm0, %v344_v21 }
 0x2b6   :  { %3301 = vmatmul.mubr.msk.f32.gmra.mrb[10].mxu1 %vm118_vm0, %v345_v22 }
 0x381   :  { %v3296_v24 = vpop.f32.mrb[6].mxu1 }
 0x382   :  { %v490_v36 = vsel %vm113_vm6, %v3296_v24, -1e+30  ;;  %v460_v37 = vpop.f32.mrb[7].mxu1  ;;  %vm1106_vm6 = vcmask 523264  }
 0x383   :  { %v489_v38 = vsel %vm112_vm7, %v460_v37, -1e+30  ;;  %v499_v25 = vsel %vm495_vm8, %v490_v36, -inf  ;;  %vm1501_vm7 = vcmask 261120  }
 0x384   :  { %500 = vmax.xlane.f32.xlu0 %v499_v25  ;;  %v496_v40 = vsel %vm495_vm8, %v489_v38, -inf  ;;  %vm4568_vm10 = vmpackc.low %vm1501_vm7, %vm1501_vm7 }
 0x385   :  { %497 = vmax.xlane.f32.xlu1 %v496_v40  ;;  %v3299_v41 = vpop.f32.mrb[8].mxu1 }
 0x386   :  { %v470_v35 = vpop.f32.mrb[9].mxu1  ;;  %v492_v49 = vsel %vm115_vm1, %v3299_v41, -1e+30  ;;  %vm2249_vm1 = vcmp.ge.s32.totalorder %v4245_v26, 24 }
 0x387   :  { %v491_v45 = vsel %vm114_vm13, %v470_v35, -1e+30  ;;  %v505_v55 = vsel %vm495_vm8, %v492_v49, -inf  ;;  %vm2245_vm13 = vcmp.lt.s32.totalorder %v4185_v54, 3  ;;  %vm2250_vm3 = vmand %vm2248_vm15, %vm2249_vm1 }
 0x388   :  { %v502_v46 = vsel %vm495_vm8, %v491_v45, -inf  ;;  %vm2247_vm2 = vmand %vm2245_vm13, %vm2246_vm14 }
 0x389   :  { %503 = vmax.xlane.f32.xlu0 %v502_v46  ;;  %v3302_v50 = vpop.f32.mrb[10].mxu1 }
 0x38a   :  { %v480_v51 = vpop.f32.mrb[11].mxu1  ;;  %v494_v57 = vsel %vm117_vm5, %v3302_v50, -1e+30  ;;  %vm2653_vm5 = vcmask 390144  }
 0x38b   :  { %v493_v52 = vsel %vm116_vm4, %v480_v51, -1e+30  ;;  %v511_v59 = vsel %vm495_vm8, %v494_v57, -inf  ;;  %vm2251_vm4 = vmor %vm2247_vm2, %vm2250_vm3 }
 0x38c   :  { %v508_v56 = vsel %vm495_vm8, %v493_v52, -inf }
 0x38d   :  { %506 = vmax.xlane.f32.xlu0 %v505_v55  ;;  %509 = vmax.xlane.f32.xlu1 %v508_v56 }
 0x391   :  { %512 = vmax.xlane.f32.xlu0 %v511_v59 }
 0x39e   :  { %3755 = vrot.lane.b32.xlu1 %v4219_v47, %s3964_s8 }
 0x411   :  { %v501_v60 = vpop.xlane.xlu0 %500 }
 0x412   :  { %v515_v62 = vsub.f32 %v490_v36, %v501_v60  ;;  %v498_v63 = vpop.xlane.xlu1 %497 }
 0x413   :  { %v514_v4 = vsub.f32 %v489_v38, %v498_v63 }
 0x414   :  { %v522_v7 = vmul.f32 1.442695, %v515_v62 }
 0x415   :  { %v520_v10 = vmul.f32 1.442695, %v514_v4 }
 0x416   :  { %3848 = vpow2.f32 %v522_v7  ;;  %v504_v11 = vpop.xlane.xlu0 %503 }
 0x417   :  { %3850 = vpow2.f32 %v520_v10  ;;  %v516_v12 = vsub.f32 %v491_v45, %v504_v11 }
 0x419   :  { %v524_v13 = vmul.f32 1.442695, %v516_v12 }
 0x41a   :  { %v507_v14 = vpop.xlane.xlu0 %506  ;;  %v510_v15 = vpop.xlane.xlu1 %509 }
 0x41b   :  { %3852 = vpow2.f32 %v524_v13  ;;  %v517_v18 = vsub.f32 %v492_v49, %v507_v14  ;;  %v518_v19 = vsub.f32 %v493_v52, %v510_v15 }
 0x41d   :  { %v526_v20 = vmul.f32 1.442695, %v517_v18  ;;  %v528_v21 = vmul.f32 1.442695, %v518_v19 }
 0x41e   :  { %v513_v22 = vpop.xlane.xlu0 %512  ;;  %v3756_v47 = vpop.permute.xlu1 %3755 }
 0x41f   :  { %3854 = vpow2.f32 %v526_v20  ;;  %v519_v23 = vsub.f32 %v494_v57, %v513_v22  ;;  %v3758_v27 = vunpack.i.h.bf16 %v3756_v47  ;;  %v3757_v28 = vunpack.i.l.bf16 %v3756_v47 }
 0x420   :  { %v3849_v16 = vpop.eup %3848  ;;  %3856 = vpow2.f32 %v528_v21 }
 0x421   :  { %v3851_v29 = vpop.eup %3850  ;;  %v530_v30 = vmul.f32 1.442695, %v519_v23  ;;  %v535_v31 = vsel %vm495_vm8, %v3849_v16, 0.0  ;;  %v3583_v48 = vpack.c.bf16 %v3758_v27, %v3757_v28 }
 0x422   :  { %536 = vadd.xlane.f32.xlu0 %v535_v31  ;;  %v532_v32 = vsel %vm495_vm8, %v3851_v29, 0.0 }
 0x423   :  { %3858 = vpow2.f32 %v530_v30  ;;  %533 = vadd.xlane.f32.xlu1 %v532_v32  ;;  %3584 = vmatprep.subr.bf16.mxu0 %v3583_v48 }
 0x424   :  { %3586 = vmatpush3.bf16.msra.mxu0 %v3583_v48 }
 0x425   :  { %v3853_v33 = vpop.eup %3852 }
 0x426   :  { %v538_v24 = vsel %vm495_vm8, %v3853_v33, 0.0 }
 0x427   :  { %539 = vadd.xlane.f32.xlu1 %v538_v24 }
 0x429   :  { %v3855_v17 = vpop.eup %3854 }
 0x42a   :  { %v3857_v36 = vpop.eup %3856  ;;  %v541_v37 = vsel %vm495_vm8, %v3855_v17, 0.0 }
 0x42b   :  { %542 = vadd.xlane.f32.xlu0 %v541_v37  ;;  %v544_v38 = vsel %vm495_vm8, %v3857_v36, 0.0 }
 0x42c   :  { %545 = vadd.xlane.f32.xlu1 %v544_v38 }
 0x42d   :  { %v3859_v25 = vpop.eup %3858 }
 0x42e   :  { %v547_v39 = vsel %vm495_vm8, %v3859_v25, 0.0 }
 0x42f   :  { %548 = vadd.xlane.f32.xlu0 %v547_v39 }
 0x43d   :  { %3765 = vrot.lane.b32.xlu1 %v4232_v58, %s3964_s8 }
 0x441   :  { %3770 = vrot.lane.b32.xlu1 %v3769_v44, %s3965_s28 }
 0x445   :  { %3760 = vrot.lane.b32.xlu0 %v4226_v53, %s3964_s8  ;;  %701 = vrot.lane.b32.xlu1 %v4215_v34, %s3965_s28 }
 0x4af   :  { %v537_v41 = vpop.xlane.xlu0 %536 }
 0x4b0   :  { %v534_v40 = vpop.xlane.xlu1 %533 }
 0x4b1   :  { %3860 = vrcp.f32 %v534_v40 }
 0x4b2   :  { %3862 = vrcp.f32 %v537_v41 }
 0x4b4   :  { %v540_v35 = vpop.xlane.xlu1 %539 }
 0x4b5   :  { %3864 = vrcp.f32 %v540_v35 }
 0x4b8   :  { %v543_v45 = vpop.xlane.xlu0 %542 }
 0x4b9   :  { %v546_v46 = vpop.xlane.xlu1 %545  ;;  %3866 = vrcp.f32 %v543_v45 }
 0x4ba   :  { %3868 = vrcp.f32 %v546_v46 }
 0x4bb   :  { %v3861_v49 = vpop.eup %3860 }
 0x4bc   :  { %v549_v50 = vpop.xlane.xlu0 %548  ;;  %v556_v51 = vmul.f32 %v3861_v49, %v3851_v29  ;;  %v3863_v56 = vpop.eup %3862 }
 0x4bd   :  { %v3766_v58 = vpop.permute.xlu1 %3765  ;;  %3870 = vrcp.f32 %v549_v50  ;;  %v557_v63 = vmul.f32 %v3863_v56, %v3849_v16 }
 0x4be   :  { %3315 = vmatprep.mubr.msk.f32.mxu0 %vm495_vm8, %v556_v51  ;;  %v3768_v52 = vunpack.i.h.bf16 %v3766_v58  ;;  %v3767_v42 = vunpack.i.l.bf16 %v3766_v58 }
 0x4bf   :  { %v3865_v59 = vpop.eup %3864 }
 0x4c0   :  { %v3761_v53 = vpop.permute.xlu0 %3760  ;;  %v3591_v55 = vpack.c.bf16 %v3768_v52, %v3767_v42  ;;  %v558_v10 = vmul.f32 %v3865_v59, %v3853_v33 }
 0x4c1   :  { %v3763_v43 = vunpack.i.h.bf16 %v3761_v53  ;;  %v3762_v44 = vunpack.i.l.bf16 %v3761_v53  ;;  %v3771_v57 = vpop.permute.xlu1 %3770 }
 0x4c2   :  { %v3773_v60 = vunpack.i.h.bf16 %v3771_v57  ;;  %v3772_v62 = vunpack.i.l.bf16 %v3771_v57 }
 0x4c3   :  { %v3587_v34 = vpack.c.bf16 %v3763_v43, %v3762_v44  ;;  %v3867_v7 = vpop.eup %3866 }
 0x4c4   :  { %v3595_v4 = vpack.c.bf16 %v3773_v60, %v3772_v62  ;;  %v3869_v11 = vpop.eup %3868  ;;  %v559_v12 = vmul.f32 %v3867_v7, %v3855_v17 }
 0x4c5   :  { %3588 = vmatprep.subr.bf16.mxu0 %v3587_v34  ;;  %v560_v14 = vmul.f32 %v3869_v11, %v3857_v36  ;;  %v702_v23 = vpop.permute.xlu1 %701 }
 0x4c6   :  { %3590 = vmatpush3.bf16.msra.mxu0 %v3587_v34 }
 0x4c7   :  { %3592 = vmatprep.subr.bf16.mxu0 %v3591_v55  ;;  %v3871_v13 = vpop.eup %3870 }
 0x4c8   :  { %v561_v15 = vmul.f32 %v3871_v13, %v3859_v25 }
 0x4ca   :  { %3594 = vmatpush3.bf16.msra.mxu0 %v3591_v55 }
 0x4cb   :  { %3596 = vmatprep.subr.bf16.mxu0 %v3595_v4 }
 0x4cd   :  { %3316 = vmatmul.mubr.msk.f32.vlgmr.msra.gmra.mrb[0].mxu0 %vm495_vm8, %v557_v63 }
 0x4ce   :  { %3318 = vmatprep.mubr.msk.f32.mxu0 %vm495_vm8, %v558_v10  ;;  %3598 = vmatpush3.bf16.msra.mxu0 %v3595_v4 }
 0x4d1   :  { %3319 = vmatmul.mubr.msk.f32.gmra.mrb[2].mxu0 %vm495_vm8, %v559_v12 }
 0x4d2   :  { %3321 = vmatprep.mubr.msk.f32.mxu0 %vm495_vm8, %v560_v14 }
 0x4d5   :  { %3322 = vmatmul.mubr.msk.f32.gmra.mrb[4].mxu0 %vm495_vm8, %v561_v15 }
 0x5a0   :  { %v3317_v18 = vpop.f32.mrb[0].mxu0 }
 0x5a1   :  { %v664_v19 = vpop.f32.mrb[1].mxu0 }
 0x5a2   :  { %3328 = vmatprep.mubr.msk.f32.mxu0 %vm118_vm0, %v664_v19 }
 0x5a3   :  { %3329 = vmatmul.mubr.msk.f32.vlgmr.msra.gmra.mrb[6].mxu0 %vm118_vm0, %v3317_v18 }
 0x5a4   :  { %v3320_v20 = vpop.f32.mrb[2].mxu0 }
 0x5a5   :  { %v674_v21 = vpop.f32.mrb[3].mxu0 }
 0x5a6   :  { %3331 = vmatprep.mubr.msk.f32.mxu0 %vm118_vm0, %v674_v21  ;;  %v922_v21 = vld [vmem:[%s4860_s0 + $0x8] sm:$0xff] }
 0x5a7   :  { %3332 = vmatmul.mubr.msk.f32.gmra.mrb[8].mxu0 %vm118_vm0, %v3320_v20  ;;  %v921_v20 = vld [vmem:[%s4860_s0] sm:$0xff] }
 0x5a8   :  { %v3323_v22 = vpop.f32.mrb[4].mxu0 }
 0x5a9   :  { %v684_v47 = vpop.f32.mrb[5].mxu0 }
 0x5aa   :  { %3334 = vmatprep.mubr.msk.f32.mxu0 %vm118_vm0, %v684_v47 }
 0x5ab   :  { %3335 = vmatmul.mubr.msk.f32.gmra.mrb[10].mxu0 %vm118_vm0, %v3323_v22  ;;  %v3599_v22 = vpack.c.bf16 %v922_v21, %v921_v20  ;;  %v1095_v21 = vld [vmem:[%s4861_s7 + $0x20] sm:$0xff] }
 0x5ad   :  { %3600 = vmatprep.subr.bf16.mxu1 %v3599_v22 }
 0x5ae   :  { %3602 = vmatpush3.bf16.msra.mxu1 %v3599_v22  ;;  %v1096_v22 = vld [vmem:[%s4861_s7 + $0x28] sm:$0xff] }
 0x676   :  { %v3330_v27 = vpop.f32.mrb[6].mxu0 }
 0x677   :  { %v794_v28 = vadd.f32 %v3330_v27, %v702_v23  ;;  %v788_v16 = vpop.f32.mrb[7].mxu0 }
 0x678   :  { %v789_v29 = vadd.f32 %v788_v16, %v702_v23 }
 0x679   :  { %v4295_v30 = vadd.f32 %v794_v28, %v4105_v2 }
 0x67a   :  { %v4298_v31 = vadd.f32 %v789_v29, %v4095_v0  ;;  %v3333_v48 = vpop.f32.mrb[8].mxu0 }
 0x67b   :  { %v804_v32 = vadd.f32 %v3333_v48, %v702_v23  ;;  %v798_v33 = vpop.f32.mrb[9].mxu0  ;;  %v826_v24 = vsel %vm118_vm0, %v4295_v30, 0.0 }
 0x67c   :  { %v799_v17 = vadd.f32 %v798_v33, %v702_v23  ;;  %827 = vadd.xlane.f32.xlu1 %v826_v24  ;;  %v823_v36 = vsel %vm118_vm0, %v4298_v31, 0.0 }
 0x67d   :  { %v4305_v37 = vadd.f32 %v804_v32, %v4114_v5  ;;  %824 = vadd.xlane.f32.xlu0 %v823_v36  ;;  %v903_v36 = vsub.s32 2, %v4185_v54 }
 0x67e   :  { %v3336_v2 = vpop.f32.mrb[10].mxu0  ;;  %v4310_v39 = vadd.f32 %v799_v17, %v4100_v1 }
 0x67f   :  { %v814_v38 = vadd.f32 %v3336_v2, %v702_v23  ;;  %v808_v25 = vpop.f32.mrb[11].mxu0  ;;  %v832_v0 = vsel %vm118_vm0, %v4305_v37, 0.0 }
 0x680   :  { %v809_v40 = vadd.f32 %v808_v25, %v702_v23  ;;  %v829_v45 = vsel %vm118_vm0, %v4310_v39, 0.0 }
 0x681   :  { %v4313_v41 = vadd.f32 %v814_v38, %v4128_v9  ;;  %833 = vadd.xlane.f32.xlu0 %v832_v0 }
 0x682   :  { %v4318_v5 = vadd.f32 %v809_v40, %v4123_v8  ;;  %v913_v40 = vsub.s32 3, %v4185_v54 }
 0x683   :  { %v838_v35 = vsel %vm118_vm0, %v4313_v41, 0.0 }
 0x684   :  { %839 = vadd.xlane.f32.xlu1 %v838_v35  ;;  %v835_v1 = vsel %vm118_vm0, %v4318_v5, 0.0 }
 0x685   :  { %830 = vadd.xlane.f32.xlu0 %v829_v45  ;;  %v904_v45 = vrot.slane %v4191_v3, %v903_v36 }
 0x689   :  { %836 = vadd.xlane.f32.xlu0 %v835_v1 }
 0x709   :  { %v828_v46 = vpop.xlane.xlu1 %827 }
 0x70a   :  { %v842_v49 = vmul.f32 0.0625, %v828_v46  ;;  %v825_v9 = vpop.xlane.xlu0 %824 }
 0x70b   :  { %v841_v50 = vmul.f32 0.0625, %v825_v9 }
 0x70c   :  { %v4325_v51 = vsub.f32 %v4295_v30, %v842_v49 }
 0x70d   :  { %v4328_v58 = vsub.f32 %v4298_v31, %v841_v50 }
 0x70e   :  { %v834_v8 = vpop.xlane.xlu0 %833  ;;  %v854_v53 = vmul.f32 %v4325_v51, %v4325_v51 }
 0x70f   :  { %v844_v52 = vmul.f32 0.0625, %v834_v8  ;;  %v853_v42 = vmul.f32 %v4328_v58, %v4328_v58  ;;  %v914_v8 = vrot.slane %v4191_v3, %v913_v40 }
 0x710   :  { %v862_v43 = vsel %vm118_vm0, %v854_v53, 0.0 }
 0x711   :  { %v4336_v44 = vsub.f32 %v4305_v37, %v844_v52  ;;  %863 = vadd.xlane.f32.xlu1 %v862_v43  ;;  %v840_v34 = vpop.xlane.xlu1 %839  ;;  %v859_v55 = vsel %vm118_vm0, %v853_v42, 0.0 }
 0x712   :  { %v846_v56 = vmul.f32 0.0625, %v840_v34  ;;  %860 = vadd.xlane.f32.xlu0 %v859_v55  ;;  %v831_v57 = vpop.xlane.xlu0 %830 }
 0x713   :  { %v843_v59 = vmul.f32 0.0625, %v831_v57  ;;  %v856_v60 = vmul.f32 %v4336_v44, %v4336_v44 }
 0x714   :  { %v4342_v62 = vsub.f32 %v4313_v41, %v846_v56 }
 0x715   :  { %v4345_v63 = vsub.f32 %v4310_v39, %v843_v59  ;;  %v868_v4 = vsel %vm118_vm0, %v856_v60, 0.0 }
 0x716   :  { %869 = vadd.xlane.f32.xlu1 %v868_v4  ;;  %v837_v7 = vpop.xlane.xlu0 %836  ;;  %v858_v10 = vmul.f32 %v4342_v62, %v4342_v62 }
 0x717   :  { %v845_v11 = vmul.f32 0.0625, %v837_v7  ;;  %v855_v12 = vmul.f32 %v4345_v63, %v4345_v63 }
 0x718   :  { %v874_v13 = vsel %vm118_vm0, %v858_v10, 0.0 }
 0x719   :  { %v851_v14 = vsub.f32 %v4318_v5, %v845_v11  ;;  %v865_v15 = vsel %vm118_vm0, %v855_v12, 0.0 }
 0x71a   :  { %875 = vadd.xlane.f32.xlu1 %v874_v13  ;;  %866 = vadd.xlane.f32.xlu0 %v865_v15 }
 0x71b   :  { %v857_v18 = vmul.f32 %v851_v14, %v851_v14 }
 0x71d   :  { %v871_v19 = vsel %vm118_vm0, %v857_v18, 0.0  ;;  %v1093_v18 = vld [vmem:[%s4861_s7 + $0x10] sm:$0xff] }
 0x71e   :  { %872 = vadd.xlane.f32.xlu0 %v871_v19  ;;  %v1094_v19 = vld [vmem:[%s4861_s7 + $0x18] sm:$0xff] }
 0x71f   :  { %v3607_v20 = vpack.c.bf16 %v1094_v19, %v1093_v18 }
 0x79e   :  { %v864_v47 = vpop.xlane.xlu1 %863 }
 0x79f   :  { %v878_v23 = vmul.f32 0.0625, %v864_v47  ;;  %v861_v27 = vpop.xlane.xlu0 %860  ;;  %v3611_v47 = vpack.c.bf16 %v1096_v22, %v1095_v21 }
 0x7a0   :  { %v877_v28 = vmul.f32 0.0625, %v861_v27  ;;  %v1098_v27 = vld [vmem:[%s4861_s7 + $0x38] sm:$0xff] }
 0x7a1   :  { %v884_v16 = vadd.f32 1e-05, %v878_v23  ;;  %v1097_v23 = vld [vmem:[%s4861_s7 + $0x30] sm:$0xff] }
 0x7a2   :  { %v883_v29 = vadd.f32 1e-05, %v877_v28  ;;  %v3615_v28 = vpack.c.bf16 %v1098_v27, %v1097_v23 }
 0x7a3   :  { %3872 = vrsqrt.f32 %v884_v16  ;;  %v870_v48 = vpop.xlane.xlu1 %869  ;;  %v3044_v16 = vld [vmem:[%s4862_s3] ss:$0 sm:$0xff] }
 0x7a4   :  { %3874 = vrsqrt.f32 %v883_v29  ;;  %v880_v32 = vmul.f32 0.0625, %v870_v48 }
 0x7a6   :  { %v886_v33 = vadd.f32 1e-05, %v880_v32 }
 0x7a7   :  { %v876_v24 = vpop.xlane.xlu1 %875  ;;  %v867_v17 = vpop.xlane.xlu0 %866 }
 0x7a8   :  { %3876 = vrsqrt.f32 %v886_v33  ;;  %v882_v2 = vmul.f32 0.0625, %v876_v24  ;;  %v879_v38 = vmul.f32 0.0625, %v867_v17 }
 0x7aa   :  { %v888_v25 = vadd.f32 1e-05, %v882_v2  ;;  %v885_v0 = vadd.f32 1e-05, %v879_v38 }
 0x7ab   :  { %v873_v35 = vpop.xlane.xlu0 %872 }
 0x7ac   :  { %3878 = vrsqrt.f32 %v888_v25  ;;  %v881_v1 = vmul.f32 0.0625, %v873_v35 }
 0x7ad   :  { %v3873_v46 = vpop.eup %3872  ;;  %3880 = vrsqrt.f32 %v885_v0 }
 0x7ae   :  { %v3875_v49 = vpop.eup %3874  ;;  %v896_v9 = vmul.f32 %v3873_v46, %v4325_v51  ;;  %v887_v50 = vadd.f32 1e-05, %v881_v1 }
 0x7af   :  { %v895_v53 = vmul.f32 %v3875_v49, %v4328_v58 }
 0x7b0   :  { %v906_v52 = vmul.f32 %v904_v45, %v896_v9  ;;  %3882 = vrsqrt.f32 %v887_v50 }
 0x7b1   :  { %v905_v42 = vmul.f32 %v904_v45, %v895_v53 }
 0x7b2   :  { %v3877_v43 = vpop.eup %3876  ;;  %v916_v55 = vadd.f32 %v914_v8, %v906_v52 }
 0x7b3   :  { %v915_v34 = vadd.f32 %v914_v8, %v905_v42  ;;  %v898_v56 = vmul.f32 %v3877_v43, %v4336_v44 }
 0x7b5   :  { %3341 = vmatprep.mubr.msk.f32.mxu1 %vm118_vm0, %v915_v34  ;;  %v908_v60 = vmul.f32 %v904_v45, %v898_v56 }
 0x7b6   :  { %v3879_v57 = vpop.eup %3878  ;;  %3342 = vmatmul.mubr.msk.f32.vlgmr.msra.gmra.mrb[12].mxu1 %vm118_vm0, %v916_v55 }
 0x7b7   :  { %v3881_v59 = vpop.eup %3880  ;;  %v900_v3 = vmul.f32 %v3879_v57, %v4342_v62  ;;  %v918_v11 = vadd.f32 %v914_v8, %v908_v60  ;;  %v1091_v62 = vld [vmem:[%s4861_s7] sm:$0xff] }
 0x7b8   :  { %v897_v51 = vmul.f32 %v3881_v59, %v4345_v63  ;;  %v1092_v63 = vld [vmem:[%s4861_s7 + $0x8] sm:$0xff] }
 0x7b9   :  { %v910_v13 = vmul.f32 %v904_v45, %v900_v3 }
 0x7ba   :  { %v3883_v58 = vpop.eup %3882  ;;  %v907_v4 = vmul.f32 %v904_v45, %v897_v51 }
 0x7bb   :  { %v899_v7 = vmul.f32 %v3883_v58, %v851_v14  ;;  %v920_v15 = vadd.f32 %v914_v8, %v910_v13  ;;  %v3603_v14 = vpack.c.bf16 %v1092_v63, %v1091_v62 }
 0x7bc   :  { %v917_v10 = vadd.f32 %v914_v8, %v907_v4 }
 0x7bd   :  { %v909_v12 = vmul.f32 %v904_v45, %v899_v7  ;;  %3604 = vmatprep.subr.bf16.mxu0 %v3603_v14 }
 0x7be   :  { %3344 = vmatprep.mubr.msk.f32.mxu1 %vm118_vm0, %v917_v10  ;;  %3606 = vmatpush3.bf16.msra.mxu0 %v3603_v14 }
 0x7bf   :  { %3345 = vmatmul.mubr.msk.f32.gmra.mrb[14].mxu1 %vm118_vm0, %v918_v11  ;;  %v919_v44 = vadd.f32 %v914_v8, %v909_v12  ;;  %3608 = vmatprep.subr.bf16.mxu0 %v3607_v20 }
 0x7c1   :  { %3347 = vmatprep.mubr.msk.f32.mxu1 %vm118_vm0, %v919_v44 }
 0x7c2   :  { %3610 = vmatpush3.bf16.msra.mxu0 %v3607_v20 }
 0x7c3   :  { %3348 = vmatmul.mubr.msk.f32.gmra.mrb[16].mxu1 %vm118_vm0, %v920_v15  ;;  %3612 = vmatprep.subr.bf16.mxu0 %v3611_v47 }
 0x7c6   :  { %3614 = vmatpush3.bf16.msra.mxu0 %v3611_v47 }
 0x7c7   :  { %3616 = vmatprep.subr.bf16.mxu0 %v3615_v28 }
 0x7ca   :  { %3618 = vmatpush3.bf16.msra.mxu0 %v3615_v28 }
 0x889   :  { %v3343_v29 = vpop.f32.mrb[12].mxu1 }
 0x88a   :  { %v1020_v48 = vadd.f32 %v3343_v29, %v3044_v16  ;;  %v1014_v32 = vpop.f32.mrb[13].mxu1  ;;  %v3051_v29 = vld [vmem:[%s4863_s5] ss:$0 sm:$0xff] }
 0x88b   :  { %v1015_v33 = vadd.f32 %v3044_v16, %v1014_v32 }
 0x88c   :  { %v1044_v24 = vmul.f32 1.702, %v1020_v48 }
 0x88d   :  { %v1043_v17 = vmul.f32 1.702, %v1015_v33 }
 0x88e   :  { %v1050_v36 = vsub.f32 0.0, %v1044_v24 }
 0x88f   :  { %v1049_v2 = vsub.f32 0.0, %v1043_v17 }
 0x890   :  { %v1057_v38 = vmul.f32 1.442695, %v1050_v36 }
 0x891   :  { %v1055_v25 = vmul.f32 1.442695, %v1049_v2 }
 0x892   :  { %3884 = vpow2.f32 %v1057_v38  ;;  %v3346_v0 = vpop.f32.mrb[14].mxu1 }
 0x893   :  { %3886 = vpow2.f32 %v1055_v25  ;;  %v1030_v40 = vadd.f32 %v3346_v0, %v3044_v16  ;;  %v1024_v35 = vpop.f32.mrb[15].mxu1 }
 0x894   :  { %v1025_v45 = vadd.f32 %v3044_v16, %v1024_v35 }
 0x895   :  { %v1046_v1 = vmul.f32 1.702, %v1030_v40 }
 0x896   :  { %v1045_v46 = vmul.f32 1.702, %v1025_v45  ;;  %v3349_v49 = vpop.f32.mrb[16].mxu1 }
 0x897   :  { %v1052_v9 = vsub.f32 0.0, %v1046_v1  ;;  %v1040_v50 = vadd.f32 %v3349_v49, %v3044_v16  ;;  %v1034_v8 = vpop.f32.mrb[17].mxu1 }
 0x898   :  { %v1051_v53 = vsub.f32 0.0, %v1045_v46  ;;  %v1035_v52 = vadd.f32 %v3044_v16, %v1034_v8 }
 0x899   :  { %v1061_v42 = vmul.f32 1.442695, %v1052_v9  ;;  %v1048_v43 = vmul.f32 1.702, %v1040_v50 }
 0x89a   :  { %v1059_v34 = vmul.f32 1.442695, %v1051_v53  ;;  %v1047_v55 = vmul.f32 1.702, %v1035_v52 }
 0x89b   :  { %3888 = vpow2.f32 %v1061_v42  ;;  %v1054_v56 = vsub.f32 0.0, %v1048_v43  ;;  %v4433_v42 = vld [vmem:[%s4827_s13 + $0x8] sm:$0xff]  ;;  %v4445_v43 = vld [vmem:[%s4827_s13 + $0x18] sm:$0xff] }
 0x89c   :  { %v3885_v57 = vpop.eup %3884  ;;  %3890 = vpow2.f32 %v1059_v34  ;;  %v1053_v59 = vsub.f32 0.0, %v1047_v55  ;;  %v4450_v34 = vld [vmem:[%s4828_s10] sm:$0xff] }
 0x89d   :  { %v3887_v51 = vpop.eup %3886  ;;  %v1068_v60 = vadd.f32 1.0, %v3885_v57  ;;  %v1065_v3 = vmul.f32 1.442695, %v1054_v56  ;;  %v4459_v56 = vld [vmem:[%s4829_s11] sm:$0xff]  ;;  %v4468_v57 = vld [vmem:[%s4829_s11 + $0x8] sm:$0xff] }
 0x89e   :  { %v1067_v58 = vadd.f32 1.0, %v3887_v51  ;;  %v1063_v4 = vmul.f32 1.442695, %v1053_v59  ;;  %v4473_v59 = vld [vmem:[%s4830_s12] sm:$0xff]  ;;  %v4482_v51 = vld [vmem:[%s4830_s12 + $0x8] sm:$0xff] }
 0x89f   :  { %3892 = vrcp.f32 %v1068_v60 }
 0x8a0   :  { %3894 = vrcp.f32 %v1067_v58 }
 0x8a1   :  { %3896 = vpow2.f32 %v1065_v3 }
 0x8a2   :  { %3898 = vpow2.f32 %v1063_v4 }
 0x8a5   :  { %v3889_v7 = vpop.eup %3888 }
 0x8a6   :  { %v3891_v10 = vpop.eup %3890  ;;  %v1070_v11 = vadd.f32 1.0, %v3889_v7 }
 0x8a7   :  { %v1069_v12 = vadd.f32 1.0, %v3891_v10 }
 0x8a8   :  { %3900 = vrcp.f32 %v1070_v11 }
 0x8a9   :  { %v3893_v13 = vpop.eup %3892  ;;  %3902 = vrcp.f32 %v1069_v12 }
 0x8aa   :  { %v3895_v44 = vpop.eup %3894  ;;  %v1086_v14 = vmul.f32 %v3893_v13, %v1020_v48 }
 0x8ab   :  { %v3897_v15 = vpop.eup %3896  ;;  %v1085_v62 = vmul.f32 %v3895_v44, %v1015_v33 }
 0x8ac   :  { %v3899_v63 = vpop.eup %3898  ;;  %v1072_v18 = vadd.f32 1.0, %v3897_v15 }
 0x8ad   :  { %v1071_v19 = vadd.f32 1.0, %v3899_v63  ;;  %3366 = vmatprep.mubr.msk.f32.mxu0 %vm1106_vm6, %v1085_v62 }
 0x8ae   :  { %3904 = vrcp.f32 %v1072_v18  ;;  %3367 = vmatmul.mubr.msk.f32.vlgmr.msra.gmra.mrb[12].mxu0 %vm1106_vm6, %v1086_v14 }
 0x8af   :  { %3906 = vrcp.f32 %v1071_v19 }
 0x8b2   :  { %v3901_v20 = vpop.eup %3900 }
 0x8b3   :  { %v3903_v21 = vpop.eup %3902  ;;  %v1088_v47 = vmul.f32 %v3901_v20, %v1030_v40 }
 0x8b4   :  { %v1087_v22 = vmul.f32 %v3903_v21, %v1025_v45 }
 0x8b6   :  { %3369 = vmatprep.mubr.msk.f32.mxu0 %vm1106_vm6, %v1087_v22 }
 0x8b7   :  { %3370 = vmatmul.mubr.msk.f32.gmra.mrb[14].mxu0 %vm1106_vm6, %v1088_v47 }
 0x8b8   :  { %v3905_v23 = vpop.eup %3904 }
 0x8b9   :  { %v3907_v27 = vpop.eup %3906  ;;  %v1090_v16 = vmul.f32 %v3905_v23, %v1040_v50 }
 0x8ba   :  { %v1089_v28 = vmul.f32 %v3907_v27, %v1035_v52 }
 0x8bc   :  { %3372 = vmatprep.mubr.msk.f32.mxu0 %vm1106_vm6, %v1089_v28 }
 0x8bd   :  { %3373 = vmatmul.mubr.msk.f32.gmra.mrb[16].mxu0 %vm1106_vm6, %v1090_v16 }
 0x8be   :  { %3405 = vmatprep.mubr.msk.f32.mxu0 %vm1501_vm7, %v4450_v34 }
 0x981   :  { %v3368_v48 = vpop.f32.mrb[12].mxu0 }
 0x982   :  { %v1197_v32 = vadd.f32 %v3368_v48, %v3051_v29  ;;  %v1191_v33 = vpop.f32.mrb[13].mxu0 }
 0x983   :  { %v1192_v24 = vadd.f32 %v3051_v29, %v1191_v33 }
 0x984   :  { %v1221_v17 = vadd.f32 %v1197_v32, %v4295_v30 }
 0x985   :  { %v1220_v36 = vadd.f32 %v1192_v24, %v4298_v31 }
 0x986   :  { %v1229_v2 = vsel %vm118_vm0, %v1221_v17, 0.0 }
 0x987   :  { %1230 = vadd.xlane.f32.xlu1 %v1229_v2  ;;  %v1226_v38 = vsel %vm118_vm0, %v1220_v36, 0.0  ;;  %v3968_v2 = vmov 0.0  }
 0x988   :  { %1227 = vadd.xlane.f32.xlu0 %v1226_v38  ;;  %3387 = vmatprep.mubr.msk.f32.mxu1 %vm3967_vm9, %v3968_v2  ;;  %3004 = vst [vmem:[%s4841_s23] sm:$0xff] %v3968_v2 }
 0x98a   :  { %v3371_v25 = vpop.f32.mrb[14].mxu0 }
 0x98b   :  { %v1207_v0 = vadd.f32 %v3371_v25, %v3051_v29  ;;  %v1201_v40 = vpop.f32.mrb[15].mxu0 }
 0x98c   :  { %v1202_v35 = vadd.f32 %v3051_v29, %v1201_v40 }
 0x98d   :  { %v1223_v45 = vadd.f32 %v1207_v0, %v4305_v37  ;;  %v4526_v0 = vld [vmem:[%s4831_s14] ss:$0 sm:$0xff] }
 0x98e   :  { %v1222_v1 = vadd.f32 %v1202_v35, %v4310_v39  ;;  %v4428_v39 = vld [vmem:[%s4827_s13] sm:$0xff] }
 0x98f   :  { %v1235_v46 = vsel %vm118_vm0, %v1223_v45, 0.0 }
 0x990   :  { %v3374_v49 = vpop.f32.mrb[16].mxu0  ;;  %1236 = vadd.xlane.f32.xlu1 %v1235_v46  ;;  %v1232_v30 = vsel %vm118_vm0, %v1222_v1, 0.0 }
 0x991   :  { %v1217_v31 = vadd.f32 %v3374_v49, %v3051_v29  ;;  %v1211_v9 = vpop.f32.mrb[17].mxu0  ;;  %1233 = vadd.xlane.f32.xlu0 %v1232_v30 }
 0x992   :  { %v1212_v50 = vadd.f32 %v3051_v29, %v1211_v9 }
 0x993   :  { %v1225_v8 = vadd.f32 %v1217_v31, %v4313_v41  ;;  %v4438_v41 = vld [vmem:[%s4827_s13 + $0x10] sm:$0xff] }
 0x994   :  { %v1224_v53 = vadd.f32 %v1212_v50, %v4318_v5  ;;  %v3631_v5 = vpack.c.bf16 %v4433_v42, %v4428_v39  ;;  %v3635_v55 = vpack.c.bf16 %v4445_v43, %v4438_v41 }
 0x995   :  { %v1241_v52 = vsel %vm118_vm0, %v1225_v8, 0.0 }
 0x996   :  { %1242 = vadd.xlane.f32.xlu1 %v1241_v52  ;;  %v1238_v37 = vsel %vm118_vm0, %v1224_v53, 0.0  ;;  %3632 = vmatprep.subr.bf16.mxu0 %v3631_v5 }
 0x997   :  { %1239 = vadd.xlane.f32.xlu0 %v1238_v37  ;;  %3634 = vmatpush3.bf16.msra.mxu0 %v3631_v5 }
 0x998   :  { %3636 = vmatprep.subr.bf16.mxu0 %v3635_v55 }
 0x99b   :  { %3638 = vmatpush3.bf16.msra.mxu0 %v3635_v55 }
 0x99e   :  { %3406 = vmatmul.mubr.msk.f32.vlgmr.msra.gmra.mrb[18].mxu0 %vm1501_vm7, %v4450_v34 }
 0x99f   :  { %3408 = vmatprep.mubr.msk.f32.mxu0 %vm1501_vm7, %v4459_v56 }
 0x9a2   :  { %3409 = vmatmul.mubr.msk.f32.gmra.mrb[20].mxu0 %vm1501_vm7, %v4468_v57 }
 0x9a3   :  { %3411 = vmatprep.mubr.msk.f32.mxu0 %vm1501_vm7, %v4473_v59 }
 0x9a6   :  { %3412 = vmatmul.mubr.msk.f32.gmra.mrb[22].mxu0 %vm1501_vm7, %v4482_v51 }
 0xa14   :  { %v1231_v60 = vpop.xlane.xlu1 %1230 }
 0xa15   :  { %v1245_v3 = vmul.f32 0.0625, %v1231_v60  ;;  %v1228_v58 = vpop.xlane.xlu0 %1227 }
 0xa16   :  { %v1244_v4 = vmul.f32 0.0625, %v1228_v58 }
 0xa17   :  { %v4486_v7 = vsub.f32 %v1221_v17, %v1245_v3 }
 0xa18   :  { %v4488_v10 = vsub.f32 %v1220_v36, %v1244_v4  ;;  %v3966_v36 = vmov 0.0|0.0   ;;  %v1306_v4 = vsub.s32 4, %v4185_v54 }
 0xa19   :  { %v1257_v11 = vmul.f32 %v4486_v7, %v4486_v7  ;;  %3619 = vmatprep.subr.bf16.mxu1 %v3966_v36 }
 0xa1a   :  { %v1256_v12 = vmul.f32 %v4488_v10, %v4488_v10 }
 0xa1b   :  { %v1265_v13 = vsel %vm118_vm0, %v1257_v11, 0.0 }
 0xa1c   :  { %1266 = vadd.xlane.f32.xlu1 %v1265_v13  ;;  %v1262_v44 = vsel %vm118_vm0, %v1256_v12, 0.0  ;;  %v1316_v13 = vsub.s32 5, %v4185_v54 }
 0xa1d   :  { %v1237_v15 = vpop.xlane.xlu1 %1236  ;;  %1263 = vadd.xlane.f32.xlu0 %v1262_v44 }
 0xa1e   :  { %v1247_v62 = vmul.f32 0.0625, %v1237_v15  ;;  %v1234_v63 = vpop.xlane.xlu0 %1233  ;;  %v3962_v15 = vld [vmem:[%s4858_s2] sm:$0x3f] }
 0xa1f   :  { %v1246_v14 = vmul.f32 0.0625, %v1234_v63 }
 0xa20   :  { %v4496_v18 = vsub.f32 %v1223_v45, %v1247_v62  ;;  %v1307_v62 = vrot.slane %v3962_v15, %v1306_v4 }
 0xa21   :  { %v4498_v19 = vsub.f32 %v1222_v1, %v1246_v14 }
 0xa22   :  { %v1259_v20 = vmul.f32 %v4496_v18, %v4496_v18 }
 0xa23   :  { %v1243_v21 = vpop.xlane.xlu1 %1242  ;;  %v1258_v22 = vmul.f32 %v4498_v19, %v4498_v19 }
 0xa24   :  { %v1249_v47 = vmul.f32 0.0625, %v1243_v21  ;;  %v1240_v23 = vpop.xlane.xlu0 %1239  ;;  %v1271_v27 = vsel %vm118_vm0, %v1259_v20, 0.0 }
 0xa25   :  { %v1248_v28 = vmul.f32 0.0625, %v1240_v23  ;;  %1272 = vadd.xlane.f32.xlu1 %v1271_v27  ;;  %v1268_v16 = vsel %vm118_vm0, %v1258_v22, 0.0  ;;  %v1317_v23 = vrot.slane %v3962_v15, %v1316_v13 }
 0xa26   :  { %v4506_v29 = vsub.f32 %v1225_v8, %v1249_v47  ;;  %1269 = vadd.xlane.f32.xlu0 %v1268_v16 }
 0xa27   :  { %v4508_v48 = vsub.f32 %v1224_v53, %v1248_v28 }
 0xa28   :  { %v1261_v32 = vmul.f32 %v4506_v29, %v4506_v29 }
 0xa29   :  { %v1260_v33 = vmul.f32 %v4508_v48, %v4508_v48 }
 0xa2a   :  { %v1277_v24 = vsel %vm118_vm0, %v1261_v32, 0.0 }
 0xa2b   :  { %1278 = vadd.xlane.f32.xlu1 %v1277_v24  ;;  %v1274_v17 = vsel %vm118_vm0, %v1260_v33, 0.0 }
 0xa2c   :  { %1275 = vadd.xlane.f32.xlu0 %v1274_v17 }
 0xa71   :  { %v4519_v38 = vpop.f32.mrb[18].mxu0 }
 0xa72   :  { %v4521_v25 = vpop.f32.mrb[19].mxu0 }
 0xa75   :  { %v3410_v40 = vpop.f32.mrb[20].mxu0 }
 0xa76   :  { %v1599_v35 = vadd.f32 %v3410_v40, %v4526_v0  ;;  %v1593_v45 = vpop.f32.mrb[21].mxu0 }
 0xa77   :  { %v1594_v1 = vadd.f32 %v4526_v0, %v1593_v45 }
 0xa79   :  { %v4530_v46 = vpack.i.bf16 %v1599_v35, %v1594_v1  ;;  %v3413_v49 = vpop.f32.mrb[22].mxu0 }
 0xa7a   :  { %v1609_v30 = vadd.f32 %v3413_v49, %v4526_v0  ;;  %v1603_v31 = vpop.f32.mrb[23].mxu0 }
 0xa7b   :  { %3775 = vrot.lane.b32.xlu0 %v4530_v46, %s3964_s8  ;;  %v1604_v9 = vadd.f32 %v4526_v0, %v1603_v31 }
 0xa7d   :  { %v4536_v50 = vpack.i.bf16 %v1609_v30, %v1604_v9 }
 0xa7f   :  { %3780 = vrot.lane.b32.xlu1 %v4536_v50, %s3964_s8 }
 0xaa9   :  { %v1267_v8 = vpop.xlane.xlu1 %1266 }
 0xaaa   :  { %v1281_v53 = vmul.f32 0.0625, %v1267_v8  ;;  %v1264_v52 = vpop.xlane.xlu0 %1263 }
 0xaab   :  { %v1280_v37 = vmul.f32 0.0625, %v1264_v52 }
 0xaac   :  { %v1287_v5 = vadd.f32 1e-05, %v1281_v53 }
 0xaad   :  { %v1286_v55 = vadd.f32 1e-05, %v1280_v37 }
 0xaae   :  { %3908 = vrsqrt.f32 %v1287_v5 }
 0xaaf   :  { %3910 = vrsqrt.f32 %v1286_v55 }
 0xab2   :  { %v1273_v60 = vpop.xlane.xlu1 %1272 }
 0xab3   :  { %v1283_v3 = vmul.f32 0.0625, %v1273_v60  ;;  %v1270_v58 = vpop.xlane.xlu0 %1269 }
 0xab4   :  { %v1282_v11 = vmul.f32 0.0625, %v1270_v58  ;;  %v1399_v58 = vld [vmem:[%s4832_s9 + $0x8] sm:$0xff] }
 0xab5   :  { %v1289_v12 = vadd.f32 1e-05, %v1283_v3  ;;  %v1398_v3 = vld [vmem:[%s4832_s9] sm:$0xff]  ;;  %s3970_s9 = smov 32  }
 0xab6   :  { %v1288_v44 = vadd.f32 1e-05, %v1282_v11 }
 0xab7   :  { %3912 = vrsqrt.f32 %v1289_v12 }
 0xab8   :  { %v3909_v63 = vpop.eup %3908  ;;  %3914 = vrsqrt.f32 %v1288_v44  ;;  %v1279_v14 = vpop.xlane.xlu1 %1278 }
 0xab9   :  { %v3911_v20 = vpop.eup %3910  ;;  %v1299_v21 = vmul.f32 %v3909_v63, %v4486_v7  ;;  %v1285_v22 = vmul.f32 0.0625, %v1279_v14  ;;  %v1276_v47 = vpop.xlane.xlu0 %1275 }
 0xaba   :  { %v1298_v27 = vmul.f32 %v3911_v20, %v4488_v10  ;;  %v1284_v28 = vmul.f32 0.0625, %v1276_v47  ;;  %v1584_v20 = vadd.f32 %v4526_v0, %v4521_v25  ;;  %v1589_v25 = vadd.f32 %v4519_v38, %v4526_v0 }
 0xabb   :  { %v1291_v16 = vadd.f32 1e-05, %v1285_v22  ;;  %v1309_v32 = vmul.f32 %v1307_v62, %v1299_v21 }
 0xabc   :  { %v1290_v33 = vadd.f32 1e-05, %v1284_v28  ;;  %v1308_v24 = vmul.f32 %v1307_v62, %v1298_v27  ;;  %v1612_v22 = vmul.f32 0.17677669, %v1584_v20  ;;  %v1613_v27 = vmul.f32 0.17677669, %v1589_v25 }
 0xabd   :  { %3916 = vrsqrt.f32 %v1291_v16  ;;  %v1319_v17 = vadd.f32 %v1317_v23, %v1309_v32 }
 0xabe   :  { %3918 = vrsqrt.f32 %v1290_v33  ;;  %v1318_v40 = vadd.f32 %v1317_v23, %v1308_v24 }
 0xac0   :  { %v3620_v35 = vpack.c.bf16 %v1319_v17, %v1318_v40 }
 0xac1   :  { %v3913_v45 = vpop.eup %3912 }
 0xac2   :  { %v3915_v1 = vpop.eup %3914  ;;  %v1301_v49 = vmul.f32 %v3913_v45, %v4496_v18  ;;  %3621 = vmatpush3.bf16.msra.mxu1 %v3620_v35 }
 0xac3   :  { %v1300_v7 = vmul.f32 %v3915_v1, %v4498_v19  ;;  %3622 = vmatprep.subr.bf16.mxu1 %v3966_v36 }
 0xac4   :  { %v1311_v10 = vmul.f32 %v1307_v62, %v1301_v49 }
 0xac5   :  { %v1310_v30 = vmul.f32 %v1307_v62, %v1300_v7 }
 0xac6   :  { %v1321_v31 = vadd.f32 %v1317_v23, %v1311_v10 }
 0xac7   :  { %v3917_v9 = vpop.eup %3916  ;;  %v1320_v8 = vadd.f32 %v1317_v23, %v1310_v30 }
 0xac8   :  { %v3919_v53 = vpop.eup %3918  ;;  %v1303_v52 = vmul.f32 %v3917_v9, %v4506_v29  ;;  %v1324_v29 = vld [vmem:[%s4833_s1] sm:$0x3f]  ;;  %s3969_s1 = smov 64  }
 0xac9   :  { %v1302_v37 = vmul.f32 %v3919_v53, %v4508_v48  ;;  %v3623_v5 = vpack.c.bf16 %v1321_v31, %v1320_v8  ;;  %v3629_v48 = vpack.c.bf16 %v1399_v58, %v1398_v3  ;;  %v3794_v53 = vpack.i.bf16 %v4433_v42, %v4428_v39 }
 0xaca   :  { %v1313_v55 = vmul.f32 %v1307_v62, %v1303_v52  ;;  %v3799_v52 = vpack.i.bf16 %v4445_v43, %v4438_v41 }
 0xacb   :  { %3624 = vmatpush3.bf16.msra.mxu1 %v3623_v5  ;;  %v1312_v60 = vmul.f32 %v1307_v62, %v1302_v37 }
 0xacc   :  { %3625 = vmatprep.subr.bf16.mxu1 %v3966_v36  ;;  %v1323_v18 = vadd.f32 %v1317_v23, %v1313_v55 }
 0xacd   :  { %v1322_v19 = vadd.f32 %v1317_v23, %v1312_v60 }
 0xacf   :  { %v3626_v4 = vpack.c.bf16 %v1323_v18, %v1322_v19 }
 0xad1   :  { %3627 = vmatpush3.bf16.msra.mxu1 %v3626_v4 }
 0xad2   :  { %3628 = vmatprep.subr.bf16.mxu1 %v3966_v36 }
 0xad4   :  { %3388 = vmatmul.mubr.msk.f32.vlgmr.msra.gmra.mrb[18].mxu1 %vm495_vm8, %v1324_v29 }
 0xad5   :  { %3630 = vmatpush3.bf16.msra.mxu1 %v3629_v48  ;;  %3394 = vmatprep.mubr.msk.f32.mxu1 %vm3967_vm9, %v3968_v2 }
 0xaed   :  { %v3776_v11 = vpop.permute.xlu0 %3775 }
 0xaee   :  { %v3778_v12 = vunpack.i.h.bf16 %v3776_v11  ;;  %v3777_v13 = vunpack.i.l.bf16 %v3776_v11 }
 0xaf0   :  { %v3639_v15 = vpack.c.bf16 %v3778_v12, %v3777_v13 }
 0xaf1   :  { %v3781_v62 = vpop.permute.xlu1 %3780 }
 0xaf2   :  { %3641 = vmatprep.subr.msk.bf16.mxu1 %vm4568_vm10, %v3639_v15  ;;  %v3783_v63 = vunpack.i.h.bf16 %v3781_v62  ;;  %v3782_v14 = vunpack.i.l.bf16 %v3781_v62 }
 0xaf4   :  { %v3645_v21 = vpack.c.bf16 %v3783_v63, %v3782_v14 }
 0xba7   :  { %v1394_v47 = vpop.f32.mrb[18].mxu1 }
 0xba8   :  { %v3389_v23 = vpop.f32.mrb[19].mxu1  ;;  %3395 = vmatmul.mubr.msk.f32.vlgmr.msra.gmra.mrb[20].mxu1 %vm118_vm0, %v1394_v47 }
 0xba9   :  { %3644 = vmatpush3.bf16.xpose.msk.msra.mxu1 %vm4568_vm10, %v3639_v15  ;;  %3422 = vmatprep.mubr.msk.f32.mxu1 %vm1501_vm7, %v1612_v22 }
 0xbaa   :  { %3647 = vmatprep.subr.msk.bf16.mxu1 %vm4568_vm10, %v3645_v21 }
 0xbb1   :  { %3650 = vmatpush3.bf16.xpose.msk.msra.mxu1 %vm4568_vm10, %v3645_v21 }
 0xbb8   :  { %3423 = vmatmul.mubr.msk.f32.vlgmr.msra.gmra.mrb[22].mxu1 %vm1501_vm7, %v1613_v27 }
 0xc7b   :  { %v4587_v28 = vpop.f32.mrb[20].mxu1 }
 0xc7c   :  { %v3396_v16 = vpop.f32.mrb[21].mxu1 }
 0xc8b   :  { %v3424_v32 = vpop.f32.mrb[22].mxu1 }
 0xc8c   :  { %v1716_v33 = vsel %vm1485_vm11, %v3424_v32, -1e+30  ;;  %v1706_v24 = vpop.f32.mrb[23].mxu1 }
 0xc8d   :  { %v1715_v17 = vsel %vm1480_vm12, %v1706_v24, -1e+30  ;;  %v1720_v40 = vsel %vm1501_vm7, %v1716_v33, -inf }
 0xc8e   :  { %1721 = vmax.xlane.f32.xlu0 %v1720_v40  ;;  %v1717_v35 = vsel %vm1501_vm7, %v1715_v17, -inf }
 0xc8f   :  { %1718 = vmax.xlane.f32.xlu1 %v1717_v35 }
 0xd1b   :  { %v1722_v38 = vpop.xlane.xlu0 %1721 }
 0xd1c   :  { %v1724_v45 = vsub.f32 %v1716_v33, %v1722_v38  ;;  %v1719_v1 = vpop.xlane.xlu1 %1718 }
 0xd1d   :  { %v1723_v49 = vsub.f32 %v1715_v17, %v1719_v1 }
 0xd1e   :  { %v1727_v7 = vmul.f32 1.442695, %v1724_v45 }
 0xd1f   :  { %v1725_v10 = vmul.f32 1.442695, %v1723_v49 }
 0xd20   :  { %3920 = vpow2.f32 %v1727_v7  ;;  %v1975_v7 = vld [vmem:[%s4834_s18 + $0x8] sm:$0xff] }
 0xd21   :  { %3922 = vpow2.f32 %v1725_v10 }
 0xd2a   :  { %v3921_v30 = vpop.eup %3920 }
 0xd2b   :  { %v3923_v31 = vpop.eup %3922  ;;  %v1732_v9 = vsel %vm1501_vm7, %v3921_v30, 0.0 }
 0xd2c   :  { %1733 = vadd.xlane.f32.xlu1 %v1732_v9  ;;  %v1729_v8 = vsel %vm1501_vm7, %v3923_v31, 0.0 }
 0xd2d   :  { %1730 = vadd.xlane.f32.xlu0 %v1729_v8 }
 0xd3d   :  { %3790 = vrot.lane.b32.xlu1 %v4536_v50, %s3969_s1 }
 0xd41   :  { %3795 = vrot.lane.b32.xlu1 %v3794_v53, %s3970_s9 }
 0xd43   :  { %3785 = vrot.lane.b32.xlu0 %v4530_v46, %s3969_s1 }
 0xd45   :  { %3800 = vrot.lane.b32.xlu1 %v3799_v52, %s3970_s9 }
 0xd47   :  { %1848 = vrot.lane.b32.xlu0 %v4526_v0, %s3970_s9 }
 0xdb9   :  { %v1734_v37 = vpop.xlane.xlu1 %1733 }
 0xdba   :  { %v1731_v5 = vpop.xlane.xlu0 %1730 }
 0xdbb   :  { %3924 = vrcp.f32 %v1731_v5 }
 0xdbc   :  { %3926 = vrcp.f32 %v1734_v37 }
 0xdbd   :  { %v3791_v50 = vpop.permute.xlu1 %3790 }
 0xdbe   :  { %v3786_v46 = vpop.permute.xlu0 %3785  ;;  %v3793_v55 = vunpack.i.h.bf16 %v3791_v50  ;;  %v3792_v60 = vunpack.i.l.bf16 %v3791_v50 }
 0xdbf   :  { %v3788_v39 = vunpack.i.h.bf16 %v3786_v46  ;;  %v3787_v42 = vunpack.i.l.bf16 %v3786_v46  ;;  %v1932_v46 = vld [vmem:[%s4835_s17] sm:$0x3] }
 0xdc0   :  { %v3655_v58 = vpack.c.bf16 %v3793_v55, %v3792_v60  ;;  %v1965_v55 = vrot.slane %v1932_v46, %v200_v61 }
 0xdc1   :  { %v3651_v18 = vpack.c.bf16 %v3788_v39, %v3787_v42  ;;  %v3796_v19 = vpop.permute.xlu1 %3795  ;;  %v1971_v42 = vrot.slane %v1932_v46, %v210_v6  ;;  %v2254_v6 = vld [vmem:[%s4836_s15 + $0x10] sm:$0xff] }
 0xdc2   :  { %v3798_v0 = vunpack.i.h.bf16 %v3796_v19  ;;  %v3797_v3 = vunpack.i.l.bf16 %v3796_v19  ;;  %v1849_v14 = vpop.permute.xlu0 %1848 }
 0xdc3   :  { %3652 = vmatprep.subr.bf16.mxu0 %v3651_v18 }
 0xdc4   :  { %3654 = vmatpush3.bf16.msra.mxu0 %v3651_v18  ;;  %v3659_v43 = vpack.c.bf16 %v3798_v0, %v3797_v3 }
 0xdc5   :  { %v3925_v41 = vpop.eup %3924  ;;  %3656 = vmatprep.subr.bf16.mxu0 %v3655_v58  ;;  %v3801_v4 = vpop.permute.xlu1 %3800 }
 0xdc6   :  { %v3927_v29 = vpop.eup %3926  ;;  %v1737_v48 = vmul.f32 %v3925_v41, %v3923_v31  ;;  %v3803_v11 = vunpack.i.h.bf16 %v3801_v4  ;;  %v3802_v12 = vunpack.i.l.bf16 %v3801_v4  ;;  %v1977_v31 = vld [vmem:[%s4834_s18 + $0x18] sm:$0xff]  ;;  %v2253_v41 = vld [vmem:[%s4836_s15 + $0x8] sm:$0xff] }
 0xdc7   :  { %v1738_v13 = vmul.f32 %v3927_v29, %v3921_v30  ;;  %v1976_v30 = vld [vmem:[%s4834_s18 + $0x10] sm:$0xff]  ;;  %v2255_v29 = vld [vmem:[%s4836_s15 + $0x18] sm:$0xff] }
 0xdc8   :  { %3658 = vmatpush3.bf16.msra.mxu0 %v3655_v58  ;;  %3433 = vmatprep.mubr.msk.f32.mxu0 %vm1501_vm7, %v1737_v48  ;;  %v3663_v15 = vpack.c.bf16 %v3803_v11, %v3802_v12  ;;  %v3671_v9 = vpack.c.bf16 %v1977_v31, %v1976_v30  ;;  %v2252_v58 = vld [vmem:[%s4836_s15] sm:$0xff]  ;;  %v3683_v48 = vpack.c.bf16 %v2255_v29, %v2254_v6 }
 0xdc9   :  { %3660 = vmatprep.subr.bf16.mxu0 %v3659_v43  ;;  %v3680_v61 = vpack.c.bf16 %v2253_v41, %v2252_v58  ;;  %v4664_v11 = vpack.i.bf16 %v2253_v41, %v2252_v58  ;;  %v3077_v12 = vld [vmem:[%s4837_s19] ss:$0 sm:$0xff]  ;;  %v4683_v31 = vpack.i.bf16 %v2255_v29, %v2254_v6 }
 0xdcb   :  { %3434 = vmatmul.mubr.msk.f32.vlgmr.msra.gmra.mrb[24].mxu0 %vm1501_vm7, %v1738_v13 }
 0xdcc   :  { %3662 = vmatpush3.bf16.msra.mxu0 %v3659_v43 }
 0xdcd   :  { %3664 = vmatprep.subr.bf16.mxu0 %v3663_v15 }
 0xdd0   :  { %3666 = vmatpush3.bf16.msra.mxu0 %v3663_v15 }
 0xe9e   :  { %v3435_v62 = vpop.f32.mrb[24].mxu0 }
 0xe9f   :  { %v1823_v63 = vpop.f32.mrb[25].mxu0 }
 0xea0   :  { %3444 = vmatprep.mubr.msk.f32.mxu0 %vm1501_vm7, %v1823_v63 }
 0xea1   :  { %3445 = vmatmul.mubr.msk.f32.vlgmr.msra.gmra.mrb[26].mxu0 %vm1501_vm7, %v3435_v62 }
 0xf74   :  { %v3446_v20 = vpop.f32.mrb[26].mxu0 }
 0xf75   :  { %v1929_v21 = vadd.f32 %v3446_v20, %v1849_v14  ;;  %v1923_v22 = vpop.f32.mrb[27].mxu0 }
 0xf76   :  { %v1924_v47 = vadd.f32 %v1923_v22, %v1849_v14 }
 0xf77   :  { %v1934_v23 = vadd.f32 %v1929_v21, %v4450_v34 }
 0xf78   :  { %v1933_v25 = vadd.f32 %v1924_v47, %v4450_v34  ;;  %v1974_v34 = vld [vmem:[%s4834_s18] sm:$0xff] }
 0xf79   :  { %v1938_v27 = vsel %vm1501_vm7, %v1934_v23, 0.0  ;;  %v3667_v10 = vpack.c.bf16 %v1975_v7, %v1974_v34 }
 0xf7a   :  { %1939 = vadd.xlane.f32.xlu0 %v1938_v27  ;;  %v1935_v16 = vsel %vm1501_vm7, %v1933_v25, 0.0 }
 0xf7b   :  { %1936 = vadd.xlane.f32.xlu1 %v1935_v16  ;;  %3668 = vmatprep.subr.bf16.mxu1 %v3667_v10 }
 0xf7c   :  { %3670 = vmatpush3.bf16.msra.mxu1 %v3667_v10 }
 0xf7d   :  { %3672 = vmatprep.subr.bf16.mxu1 %v3671_v9 }
 0xf80   :  { %3674 = vmatpush3.bf16.msra.mxu1 %v3671_v9  ;;  %v4690_v9 = vld [vmem:[%s4839_s16] ss:$0 sm:$0xff] }
 0xf81   :  { %3679 = vmatprep.subr.bf16.mxu1 %v3966_v36 }
0x1007   :  { %v1940_v32 = vpop.xlane.xlu0 %1939 }
0x1008   :  { %v1943_v33 = vmul.f32 0.03125, %v1940_v32  ;;  %v1937_v24 = vpop.xlane.xlu1 %1936  ;;  %v2090_v32 = vld [vmem:[%s4838_s20] sm:$0xff] }
0x1009   :  { %v1942_v17 = vmul.f32 0.03125, %v1937_v24 }
0x100a   :  { %v1945_v40 = vsub.f32 %v1934_v23, %v1943_v33  ;;  %v2091_v33 = vld [vmem:[%s4838_s20 + $0x8] sm:$0xff] }
0x100b   :  { %v1944_v35 = vsub.f32 %v1933_v25, %v1942_v17  ;;  %v3675_v17 = vpack.c.bf16 %v2091_v33, %v2090_v32 }
0x100c   :  { %v1947_v1 = vmul.f32 %v1945_v40, %v1945_v40 }
0x100d   :  { %v1946_v38 = vmul.f32 %v1944_v35, %v1944_v35  ;;  %3676 = vmatprep.subr.bf16.mxu0 %v3675_v17 }
0x100e   :  { %v1951_v49 = vsel %vm1501_vm7, %v1947_v1, 0.0  ;;  %3678 = vmatpush3.bf16.msra.mxu0 %v3675_v17 }
0x100f   :  { %v1948_v45 = vsel %vm1501_vm7, %v1946_v38, 0.0 }
0x1010   :  { %1949 = vadd.xlane.f32.xlu0 %v1948_v45 }
0x1014   :  { %1952 = vadd.xlane.f32.xlu0 %v1951_v49 }
0x102a   :  { %3805 = vrot.lane.b32.xlu0 %v4664_v11, %s3964_s8 }
0x102e   :  { %3815 = vrot.lane.b32.xlu0 %v4664_v11, %s3969_s1 }
0x109d   :  { %v1950_v8 = vpop.xlane.xlu0 %1949 }
0x109e   :  { %v1954_v53 = vmul.f32 0.03125, %v1950_v8  ;;  %v28_v8 = vstv %s4840_s21 }
0x109f   :  { %29 = vst [vmem:[#allocation2] sm:$0x1] %v28_v8 }
0x10a0   :  { %v1956_v52 = vadd.f32 1e-05, %v1954_v53 }
0x10a1   :  { %v1953_v37 = vpop.xlane.xlu0 %1952 }
0x10a2   :  { %3928 = vrsqrt.f32 %v1956_v52  ;;  %v1955_v5 = vmul.f32 0.03125, %v1953_v37 }
0x10a4   :  { %v1957_v50 = vadd.f32 1e-05, %v1955_v5 }
0x10a6   :  { %3930 = vrsqrt.f32 %v1957_v50 }
0x10ac   :  { %v3929_v60 = vpop.eup %3928 }
0x10ad   :  { %v1960_v39 = vmul.f32 %v3929_v60, %v1944_v35 }
0x10af   :  { %v1966_v18 = vmul.f32 %v1965_v55, %v1960_v39 }
0x10b0   :  { %v3931_v19 = vpop.eup %3930 }
0x10b1   :  { %v1961_v0 = vmul.f32 %v3931_v19, %v1945_v40  ;;  %v4637_v3 = vadd.f32 %v1971_v42, %v1966_v18  ;;  %v3806_v40 = vpop.permute.xlu0 %3805 }
0x10b2   :  { %v3808_v35 = vunpack.i.h.bf16 %v3806_v40  ;;  %v3807_v38 = vunpack.i.l.bf16 %v3806_v40 }
0x10b3   :  { %v1967_v43 = vmul.f32 %v1965_v55, %v1961_v0  ;;  %3455 = vmatprep.mubr.msk.f32.mxu1 %vm1501_vm7, %v4637_v3 }
0x10b4   :  { %v3685_v45 = vpack.c.bf16 %v3808_v35, %v3807_v38 }
0x10b5   :  { %v4647_v4 = vadd.f32 %v1971_v42, %v1967_v43  ;;  %v3816_v1 = vpop.permute.xlu0 %3815  ;;  %v3080_v43 = vld [vmem:[#allocation2] ss:$0 sm:$0xff] }
0x10b6   :  { %3686 = vmatprep.subr.bf16.mxu0 %v3685_v45  ;;  %v3818_v34 = vunpack.i.h.bf16 %v3816_v1  ;;  %v3817_v7 = vunpack.i.l.bf16 %v3816_v1 }
0x10b7   :  { %3456 = vmatmul.mubr.msk.f32.vlgmr.msra.gmra.mrb[24].mxu1 %vm1501_vm7, %v4647_v4 }
0x10b8   :  { %3681 = vmatpush3.bf16.msra.mxu1 %v3680_v61  ;;  %3473 = vmatprep.mubr.msk.f32.mxu1 %vm3967_vm9, %v3968_v2  ;;  %v3693_v10 = vpack.c.bf16 %v3818_v34, %v3817_v7 }
0x10b9   :  { %3682 = vmatprep.subr.bf16.mxu1 %v3966_v36 }
0x10bc   :  { %3684 = vmatpush3.bf16.msra.mxu1 %v3683_v48 }
0x10bd   :  { %3694 = vmatprep.subr.bf16.mxu1 %v3693_v10 }
0x10bf   :  { %3474 = vmatmul.mubr.msk.f32.vlgmr.msra.gmra.mrb[26].mxu1 %vm1501_vm7, %v4587_v28 }
0x10c0   :  { %3501 = vmatprep.mubr.msk.f32.mxu1 %vm1501_vm7, %v4637_v3  ;;  %3696 = vmatpush3.bf16.msra.mxu1 %v3693_v10 }
0x118a   :  { %v3457_v13 = vpop.f32.mrb[24].mxu1 }
0x118b   :  { %v2063_v15 = vadd.f32 %v3457_v13, %v3077_v12  ;;  %v2057_v62 = vpop.f32.mrb[25].mxu1 }
0x118c   :  { %v2058_v63 = vadd.f32 %v3077_v12, %v2057_v62 }
0x118d   :  { %v2069_v14 = vsub.f32 0.0, %v2063_v15 }
0x118e   :  { %v2068_v20 = vsub.f32 0.0, %v2058_v63 }
0x118f   :  { %v2072_v21 = vmul.f32 1.442695, %v2069_v14 }
0x1190   :  { %v2070_v22 = vmul.f32 1.442695, %v2068_v20 }
0x1191   :  { %3932 = vpow2.f32 %v2072_v21 }
0x1192   :  { %3934 = vpow2.f32 %v2070_v22  ;;  %v4673_v47 = vpop.f32.mrb[26].mxu1 }
0x1193   :  { %v3475_v23 = vpop.f32.mrb[27].mxu1  ;;  %v2333_v10 = vadd.f32 %v4690_v9, %v4673_v47 }
0x119b   :  { %v3933_v25 = vpop.eup %3932 }
0x119c   :  { %v3935_v27 = vpop.eup %3934  ;;  %v2075_v16 = vadd.f32 1.0, %v3933_v25 }
0x119d   :  { %v2074_v24 = vadd.f32 1.0, %v3935_v27 }
0x119e   :  { %3936 = vrcp.f32 %v2075_v16 }
0x119f   :  { %3938 = vrcp.f32 %v2074_v24 }
0x11a0   :  { %3940 = vtanh.f32 %v2058_v63 }
0x11a1   :  { %3942 = vtanh.f32 %v2063_v15 }
0x11a8   :  { %v3937_v49 = vpop.eup %3936 }
0x11a9   :  { %2084 = vrot.lane.b32.xlu1 %v3937_v49, %s3963_s27  ;;  %v3939_v30 = vpop.eup %3938 }
0x11aa   :  { %v3941_v52 = vpop.eup %3940 }
0x11ab   :  { %v3943_v5 = vpop.eup %3942 }
0x11ad   :  { %2082 = vrot.lane.b32.xlu1 %v3939_v30, %s3963_s27 }
0x11b1   :  { %3810 = vrot.lane.b32.xlu1 %v4683_v31, %s3964_s8 }
0x11b5   :  { %2352 = vrot.lane.b32.xlu1 %v4690_v9, %s3964_s8 }
0x11b9   :  { %3820 = vrot.lane.b32.xlu1 %v4683_v31, %s3969_s1 }
0x121b   :  { %v2085_v53 = vpop.permute.xlu1 %2084 }
0x121c   :  { %v2089_v46 = vmul.f32 %v3943_v5, %v2085_v53  ;;  %v2560_v53 = vmul.f32 0.17677669, %v2333_v10 }
0x121f   :  { %v2083_v37 = vpop.permute.xlu1 %2082 }
0x1220   :  { %v2088_v50 = vmul.f32 %v3941_v52, %v2083_v37 }
0x1222   :  { %3462 = vmatprep.mubr.msk.f32.mxu0 %vm118_vm0, %v2088_v50 }
0x1223   :  { %v3811_v55 = vpop.permute.xlu1 %3810  ;;  %3463 = vmatmul.mubr.msk.f32.vlgmr.msra.gmra.mrb[28].mxu0 %vm118_vm0, %v2089_v46  ;;  %vm2180_vm0 = vcmask 7168  }
0x1224   :  { %v3813_v60 = vunpack.i.h.bf16 %v3811_v55  ;;  %v3812_v39 = vunpack.i.l.bf16 %v3811_v55  ;;  %3484 = vmatprep.mubr.msk.f32.mxu0 %vm1501_vm7, %v4637_v3  ;;  %3688 = vmatpush3.bf16.msra.mxu0 %v3685_v45  ;;  %v3971_v55 = vmov 0  }
0x1225   :  { %3835 = vset.pattern.permute.xlu0 %v3971_v55  ;;  %3834 = vset.pattern.permute.xlu1 %v3971_v55 }
0x1226   :  { %v3689_v42 = vpack.c.bf16 %v3813_v60, %v3812_v39 }
0x1227   :  { %v2353_v18 = vpop.permute.xlu1 %2352 }
0x1228   :  { %3690 = vmatprep.subr.bf16.mxu0 %v3689_v42 }
0x1229   :  { %3692 = vmatpush3.bf16.msra.mxu0 %v3689_v42 }
0x122a   :  { %3701 = vmatprep.subr.bf16.mxu0 %v3966_v36 }
0x122b   :  { %v3821_v19 = vpop.permute.xlu1 %3820 }
0x122c   :  { %v3823_v0 = vunpack.i.h.bf16 %v3821_v19  ;;  %v3822_v58 = vunpack.i.l.bf16 %v3821_v19  ;;  %3485 = vmatmul.mubr.msk.f32.vlgmr.msra.gmra.mrb[30].mxu0 %vm1501_vm7, %v4459_v56 }
0x122d   :  { %3487 = vmatprep.mubr.msk.f32.mxu0 %vm1501_vm7, %v4468_v57 }
0x122e   :  { %v3697_v41 = vpack.c.bf16 %v3823_v0, %v3822_v58 }
0x1230   :  { %3488 = vmatmul.mubr.msk.f32.gmra.mrb[32].mxu0 %vm1501_vm7, %v4647_v4  ;;  %3698 = vmatprep.subr.bf16.mxu1 %v3697_v41 }
0x1231   :  { %3700 = vmatpush3.bf16.msra.mxu1 %v3697_v41  ;;  %3490 = vmatprep.mubr.msk.f32.mxu0 %vm1501_vm7, %v4473_v59 }
0x1232   :  { %3713 = vmatprep.subr.bf16.mxu1 %v3966_v36 }
0x1234   :  { %3491 = vmatmul.mubr.msk.f32.gmra.mrb[34].mxu0 %vm1501_vm7, %v4482_v51  ;;  %3502 = vmatmul.mubr.msk.f32.vlgmr.msra.gmra.mrb[28].mxu1 %vm1501_vm7, %v4459_v56 }
0x1235   :  { %3504 = vmatprep.mubr.msk.f32.mxu1 %vm1501_vm7, %v4468_v57  ;;  %3522 = vmatprep.mubr.msk.f32.mxu0 %vm3967_vm9, %v3968_v2 }
0x1238   :  { %3505 = vmatmul.mubr.msk.f32.gmra.mrb[30].mxu1 %vm1501_vm7, %v4647_v4 }
0x1239   :  { %3507 = vmatprep.mubr.msk.f32.mxu1 %vm1501_vm7, %v4473_v59 }
0x123c   :  { %3508 = vmatmul.mubr.msk.f32.gmra.mrb[32].mxu1 %vm1501_vm7, %v4482_v51 }
0x123d   :  { %3537 = vmatprep.mubr.msk.f32.mxu1 %vm3967_vm9, %v3968_v2 }
0x12f6   :  { %v3464_v56 = vpop.f32.mrb[28].mxu0 }
0x12f7   :  { %v2177_v61 = vadd.f32 %v3464_v56, %v3080_v43  ;;  %v2171_v57 = vpop.f32.mrb[29].mxu0 }
0x12f8   :  { %v2172_v47 = vadd.f32 %v3080_v43, %v2171_v57 }
0x12f9   :  { %v2213_v6 = vsel %vm2180_vm0, %v2177_v61, -inf }
0x12fa   :  { %v2214_v29 = vrot.slane %v2213_v6, 4  ;;  %v2181_v60 = vsel %vm2180_vm0, %v2172_v47, -inf }
0x12fb   :  { %v2182_v39 = vrot.slane %v2181_v60, 4 }
0x12fc   :  { %v2215_v48 = vmax.f32 %v2213_v6, %v2214_v29 }
0x12fd   :  { %v2183_v42 = vmax.f32 %v2181_v60, %v2182_v39 }
0x12fe   :  { %v2216_v12 = vrot.slane %v2215_v48, 2 }
0x12ff   :  { %v3486_v13 = vpop.f32.mrb[30].mxu0 }
0x1300   :  { %v2217_v15 = vmax.f32 %v2215_v48, %v2216_v12  ;;  %v2427_v62 = vadd.f32 %v3486_v13, %v2353_v18  ;;  %v2421_v59 = vpop.f32.mrb[31].mxu0 }
0x1301   :  { %v2422_v63 = vadd.f32 %v2421_v59, %v2353_v18 }
0x1302   :  { %v2218_v14 = vrot.slane %v2217_v15, 1 }
0x1303   :  { %v3702_v51 = vpack.c.bf16 %v2427_v62, %v2422_v63  ;;  %v3489_v20 = vpop.f32.mrb[32].mxu0 }
0x1304   :  { %v2219_v21 = vmax.f32 %v2217_v15, %v2218_v14  ;;  %v2437_v22 = vadd.f32 %v3489_v20, %v2353_v18  ;;  %v2431_v23 = vpop.f32.mrb[33].mxu0 }
0x1305   :  { %v2432_v25 = vadd.f32 %v2431_v23, %v2353_v18  ;;  %3704 = vmatpush3.bf16.xpose.msk.msra.mxu0 %vm4568_vm10, %v3702_v51 }
0x1306   :  { %v2220_v27 = vsub.f32 %v2177_v61, %v2219_v21  ;;  %3705 = vmatprep.subr.bf16.mxu0 %v3966_v36 }
0x1307   :  { %v3706_v16 = vpack.c.bf16 %v2437_v22, %v2432_v25  ;;  %v3492_v32 = vpop.f32.mrb[34].mxu0  ;;  %v4733_v33 = vpop.f32.mrb[28].mxu1 }
0x1308   :  { %v2221_v24 = vmul.f32 1.442695, %v2220_v27  ;;  %v2447_v17 = vadd.f32 %v3492_v32, %v2353_v18  ;;  %v2441_v40 = vpop.f32.mrb[35].mxu0  ;;  %v4735_v35 = vpop.f32.mrb[29].mxu1 }
0x1309   :  { %v2442_v38 = vadd.f32 %v2441_v40, %v2353_v18  ;;  %v2184_v18 = vrot.slane %v2183_v42, 2 }
0x130a   :  { %3944 = vpow2.f32 %v2221_v24 }
0x130b   :  { %v3710_v45 = vpack.c.bf16 %v2447_v17, %v2442_v38  ;;  %v4737_v1 = vpop.f32.mrb[30].mxu1  ;;  %v2185_v19 = vmax.f32 %v2183_v42, %v2184_v18 }
0x130c   :  { %v4739_v49 = vpop.f32.mrb[31].mxu1 }
0x130d   :  { %3708 = vmatpush3.bf16.xpose.msk.msra.mxu0 %vm4568_vm10, %v3706_v16  ;;  %v2186_v0 = vrot.slane %v2185_v19, 1 }
0x130e   :  { %3709 = vmatprep.subr.bf16.mxu0 %v3966_v36 }
0x130f   :  { %v2187_v58 = vmax.f32 %v2185_v19, %v2186_v0  ;;  %v3509_v40 = vpop.f32.mrb[32].mxu1 }
0x1311   :  { %v2188_v41 = vsub.f32 %v2172_v47, %v2187_v58 }
0x1313   :  { %v2189_v56 = vmul.f32 1.442695, %v2188_v41 }
0x1314   :  { %v3945_v34 = vpop.eup %3944 }
0x1315   :  { %v2223_v7 = vsel %vm2180_vm0, %v3945_v34, 0.0  ;;  %3712 = vmatpush3.bf16.xpose.msk.msra.mxu0 %vm4568_vm10, %v3710_v45 }
0x1316   :  { %v2224_v30 = vrot.slane %v2223_v7, 4  ;;  %3551 = vmatprep.subr.mxu0 %v3968_v2 }
0x1318   :  { %v2225_v8 = vadd.f32 %v2224_v30, %v2223_v7 }
0x131a   :  { %v2226_v52 = vrot.slane %v2225_v8, 2 }
0x131c   :  { %v2227_v37 = vadd.f32 %v2226_v52, %v2225_v8  ;;  %3523 = vmatmul.mubr.msk.f32.vlgmr.msra.gmra.mrb[36].mxu0 %vm1501_vm7, %v2560_v53 }
0x131d   :  { %3553 = vmatprep.mubr.msk.f32.mxu0 %vm3967_vm9, %v3968_v2 }
0x131e   :  { %v2228_v5 = vrot.slane %v2227_v37, 1 }
0x1320   :  { %v2229_v50 = vadd.f32 %v2228_v5, %v2227_v37 }
0x1322   :  { %3946 = vrcp.f32 %v2229_v50 }
0x1323   :  { %3948 = vpow2.f32 %v2189_v56 }
0x132c   :  { %v3947_v44 = vpop.eup %3946 }
0x132d   :  { %v4753_v46 = vmul.f32 %v3947_v44, %v3945_v34  ;;  %v3949_v61 = vpop.eup %3948 }
0x132e   :  { %v2191_v6 = vsel %vm2180_vm0, %v3949_v61, 0.0 }
0x132f   :  { %v2192_v43 = vrot.slane %v2191_v6, 4 }
0x1331   :  { %v2193_v57 = vadd.f32 %v2192_v43, %v2191_v6 }
0x1333   :  { %v2194_v13 = vrot.slane %v2193_v57, 2 }
0x1335   :  { %v2195_v62 = vadd.f32 %v2194_v13, %v2193_v57 }
0x1337   :  { %v2196_v59 = vrot.slane %v2195_v62, 1 }
0x1339   :  { %v2197_v63 = vadd.f32 %v2196_v59, %v2195_v62 }
0x133b   :  { %3950 = vrcp.f32 %v2197_v63 }
0x1345   :  { %v3951_v54 = vpop.eup %3950 }
0x1346   :  { %v2199_v14 = vmul.f32 %v3951_v54, %v3949_v61 }
0x13ef   :  { %v2648_v29 = vpop.f32.mrb[36].mxu0 }
0x13f0   :  { %v2652_v48 = vsel %vm2251_vm4, %v2648_v29, -1e+30  ;;  %v3524_v12 = vpop.f32.mrb[37].mxu0 }
0x13f1   :  { %v2654_v15 = vsel %vm2653_vm5, %v2652_v48, -inf }
0x13f2   :  { %2655 = vmax.xlane.f32.xlu0 %v2654_v15 }
0x1408   :  { %2462 = vrot.lane.b32.xlu0 %v4690_v9, %s3969_s1 }
0x140c   :  { %3830 = vrot.lane.b32.xlu0 %v4683_v31, %s3970_s9 }
0x1410   :  { %2202 = vperm.xlu0 %3835, %v2199_v14  }
0x147f   :  { %v2656_v51 = vpop.xlane.xlu0 %2655 }
0x1480   :  { %v2657_v20 = vsub.f32 %v2652_v48, %v2656_v51 }
0x1482   :  { %v2658_v21 = vmul.f32 1.442695, %v2657_v20  ;;  %v2995_v20 = vstv %s4842_s22 }
0x1483   :  { %v2463_v22 = vpop.permute.xlu0 %2462  ;;  %vm2996_vm6 = vcmp.eq.s32.totalorder %v4245_v26, %v2995_v20 }
0x1484   :  { %3952 = vpow2.f32 %v2658_v21  ;;  %v2532_v23 = vadd.f32 %v4735_v35, %v2463_v22  ;;  %v2537_v25 = vadd.f32 %v4733_v33, %v2463_v22  ;;  %v2542_v27 = vadd.f32 %v4739_v49, %v2463_v22  ;;  %v2551_v35 = vpop.f32.mrb[33].mxu1 }
0x1485   :  { %v2547_v16 = vadd.f32 %v4737_v1, %v2463_v22  ;;  %v2557_v38 = vadd.f32 %v3509_v40, %v2463_v22  ;;  %v2552_v33 = vadd.f32 %v2551_v35, %v2463_v22 }
0x1486   :  { %v3714_v32 = vpack.c.bf16 %v2537_v25, %v2532_v23  ;;  %v3110_v23 = vsel %vm2996_vm6, 1.0, %v3968_v2 }
0x1487   :  { %v3717_v24 = vpack.c.bf16 %v2547_v16, %v2542_v27  ;;  %v3720_v45 = vpack.c.bf16 %v2557_v38, %v2552_v33  ;;  %v3831_v10 = vpop.permute.xlu0 %3830 }
0x1488   :  { %3715 = vmatpush3.bf16.msra.mxu1 %v3714_v32  ;;  %v3833_v8 = vunpack.i.h.bf16 %v3831_v10  ;;  %v3832_v53 = vunpack.i.l.bf16 %v3831_v10 }
0x1489   :  { %3716 = vmatprep.subr.bf16.mxu1 %v3966_v36 }
0x148c   :  { %3718 = vmatpush3.bf16.msra.mxu1 %v3717_v24 }
0x148d   :  { %3719 = vmatprep.subr.bf16.mxu1 %v3966_v36 }
0x148e   :  { %v3953_v31 = vpop.eup %3952 }
0x148f   :  { %v2660_v17 = vsel %vm2653_vm5, %v3953_v31, 0.0  ;;  %v2203_v55 = vpop.permute.xlu0 %2202 }
0x1490   :  { %2661 = vadd.xlane.f32.xlu1 %v2660_v17  ;;  %3721 = vmatpush3.bf16.msra.mxu1 %v3720_v45  ;;  %v2205_v60 = vmul.f32 %v2203_v55, %v4637_v3 }
0x1491   :  { %3722 = vmatprep.subr.bf16.mxu1 %v3966_v36 }
0x1492   :  { %v2206_v39 = vsel %vm1501_vm7, %v2205_v60, 0.0 }
0x1493   :  { %v2207_v42 = vrot.slane %v2206_v39, 4 }
0x1495   :  { %v2208_v0 = vadd.f32 %v2207_v42, %v2206_v39 }
0x14a1   :  { %3825 = vrot.lane.b32.xlu1 %v4664_v11, %s3970_s9  ;;  %v3726_v11 = vpack.c.bf16 %v3833_v8, %v3832_v53 }
0x14a5   :  { %2234 = vperm.xlu1 %3834, %v4753_v46  }
0x14a9   :  { %2750 = vrot.lane.b32.xlu1 %v4690_v9, %s3970_s9 }
0x151d   :  { %v2662_v1 = vpop.xlane.xlu1 %2661 }
0x151e   :  { %3954 = vrcp.f32 %v2662_v1 }
0x1521   :  { %v3826_v49 = vpop.permute.xlu1 %3825 }
0x1522   :  { %v3828_v34 = vunpack.i.h.bf16 %v3826_v49  ;;  %v3827_v7 = vunpack.i.l.bf16 %v3826_v49 }
0x1524   :  { %v3723_v52 = vpack.c.bf16 %v3828_v34, %v3827_v7 }
0x1525   :  { %v2235_v50 = vpop.permute.xlu1 %2234 }
0x1526   :  { %v2237_v44 = vmul.f32 %v2235_v50, %v4647_v4  ;;  %v2209_v4 = vrot.slane %v2208_v0, 2 }
0x1528   :  { %v3955_v30 = vpop.eup %3954  ;;  %v2238_v46 = vsel %vm1501_vm7, %v2237_v44, 0.0  ;;  %v2210_v29 = vadd.f32 %v2209_v4, %v2208_v0 }
0x1529   :  { %v2664_v37 = vmul.f32 %v3955_v30, %v3953_v31  ;;  %v2239_v47 = vrot.slane %v2238_v46, 4  ;;  %v2751_v19 = vpop.permute.xlu1 %2750 }
0x152a   :  { %v2211_v48 = vrot.slane %v2210_v29, 1 }
0x152b   :  { %3538 = vmatmul.mubr.msk.f32.vlgmr.msra.gmra.mrb[34].mxu1 %vm495_vm8, %v2664_v37  ;;  %vm2979_vm8 = vcmask 16384  }
0x152c   :  { %3724 = vmatpush3.bf16.msra.mxu1 %v3723_v52  ;;  %3548 = vmatprep.mubr.msk.f32.mxu1 %vm3967_vm9, %v3968_v2  ;;  %v2212_v12 = vadd.f32 %v2211_v48, %v2210_v29 }
0x152d   :  { %3725 = vmatprep.subr.bf16.mxu1 %v3966_v36  ;;  %v2240_v36 = vadd.f32 %v2239_v47, %v2238_v46 }
0x152f   :  { %v2241_v18 = vrot.slane %v2240_v36, 2 }
0x1530   :  { %3727 = vmatpush3.bf16.msra.mxu1 %v3726_v11 }
0x1531   :  { %v2242_v58 = vadd.f32 %v2241_v18, %v2240_v36 }
0x1533   :  { %v2243_v43 = vrot.slane %v2242_v58, 1 }
0x1535   :  { %v2244_v3 = vadd.f32 %v2243_v43, %v2242_v58 }
0x15fe   :  { %v2734_v9 = vpop.f32.mrb[34].mxu1 }
0x15ff   :  { %v3539_v5 = vpop.f32.mrb[35].mxu1  ;;  %3549 = vmatmul.mubr.msk.f32.vlgmr.msra.gmra.mrb[36].mxu1 %vm1501_vm7, %v2734_v9 }
0x16d2   :  { %v2822_v41 = vpop.f32.mrb[36].mxu1 }
0x16d3   :  { %v2823_v56 = vadd.f32 %v2822_v41, %v2751_v19  ;;  %v3550_v61 = vpop.f32.mrb[37].mxu1 }
0x16d5   :  { %v2826_v6 = vadd.f32 %v2823_v56, %v4587_v28 }
0x16d7   :  { %v2828_v57 = vrot.slane %v2826_v6, 3 }
0x16d9   :  { %3552 = vmatpush3.xpose.msk.msra.mxu0 %vm1501_vm7, %v2828_v57 }
0x16da   :  { %3556 = vmatprep.subr.mxu0 %v3968_v2 }
0x16dc   :  { %3554 = vmatmul.mubr.msk.f32.vlgmr.msra.gmra.mrb[38].mxu0 %vm1501_vm7, %v2244_v3 }
0x16dd   :  { %3557 = vmatpush3.xpose.msk.msra.mxu0 %vm1501_vm7, %v2826_v6  ;;  %3558 = vmatprep.mubr.msk.f32.mxu0 %vm3967_vm9, %v3968_v2 }
0x16e4   :  { %3559 = vmatmul.mubr.msk.f32.vlgmr.msra.gmra.mrb[38].mxu0 %vm1501_vm7, %v2212_v12  ;;  %vm3007_vm7 = vcmask 0  }
0x17b7   :  { %v2975_v28 = vpop.f32.mrb[38].mxu0 }
0x17b8   :  { %3005 = vst.msk [vmem:[%s4841_s23] sm:$0x1] %vm2979_vm8, %v2975_v28  ;;  %v3560_v13 = vpop.f32.mrb[39].mxu0  ;;  %v2980_v15 = vsel %vm2979_vm8, %v2975_v28, -inf }
0x17b9   :  { %2981 = vmax.xlane.f32.xlu1 %v2980_v15 }
0x1846   :  { %v2982_v62 = vpop.xlane.xlu1 %2981 }
0x1847   :  { %v2983_v59 = vsub.f32 %v2975_v28, %v2982_v62 }
0x1849   :  { %v2984_v63 = vmul.f32 1.442695, %v2983_v59 }
0x184b   :  { %3956 = vpow2.f32 %v2984_v63 }
0x1855   :  { %v3957_v54 = vpop.eup %3956 }
0x1856   :  { %v2986_v14 = vsel %vm2979_vm8, %v3957_v54, 0.0 }
0x1857   :  { %2987 = vadd.xlane.f32.xlu0 %v2986_v14 }
0x18e4   :  { %v2988_v51 = vpop.xlane.xlu0 %2987 }
0x18e5   :  { %3958 = vlog2.f32 %v2988_v51 }
0x18ef   :  { %v3959_v21 = vpop.eup %3958 }
0x18f0   :  { %v2990_v22 = vmul.f32 0.6931472, %v3959_v21 }
0x18f2   :  { %v2991_v25 = vsub.f32 %v2983_v59, %v2990_v22 }
0x18f4   :  { %v2999_v27 = vmul.f32 %v3110_v23, %v2991_v25  ;;  %v2992_v16 = vmul.f32 1.442695, %v2991_v25 }
0x18f6   :  { %v3000_v32 = vsel %vm2979_vm8, %v2999_v27, 0.0  ;;  %3960 = vpow2.f32 %v2992_v16 }
0x18f7   :  { %3001 = vadd.xlane.f32.xlu0 %v3000_v32 }
0x1900   :  { %v3961_v24 = vpop.eup %3960 }
0x1901   :  { %3006 = vst.msk [vmem:[%s4841_s23 + $0x1] sm:$0x1] %vm2979_vm8, %v3961_v24 }
0x1984   :  { %v3002_v31 = vpop.xlane.xlu0 %3001 }
0x1985   :  { %v3003_v26 = vsub.f32 0.0, %v3002_v31 }
0x1987   :  { %3008 = vst.msk [vmem:[%s4841_s23 + $0x2] sm:$0x1] %vm3007_vm7, %v3003_v26 }

</bundles_post_ra>
